<compile_context>
chip_gen: v7x
topology: tpu7x:2x2x1
jax: 0.10.0
libtpu: 0.0.40
codegen_flags: <defaults>
</compile_context>

<pallas_src>
import functools

import jax
import jax.numpy as jnp
import numpy as np
from jax.experimental import pallas as pl
from jax.experimental.pallas import tpu as pltpu

_VMEM = pl.BlockSpec(memory_space=pltpu.MemorySpace.VMEM)


def _conv_sizes(H, W):
    oh1, ow1 = (H - 3) // 2 + 1, (W - 3) // 2 + 1   # Conv2d(k=3, s=2), VALID
    ph, pw = oh1 // 2, ow1 // 2                      # MaxPool2d(2), floor
    oh2, ow2 = (ph - 3) // 2 + 1, (pw - 3) // 2 + 1  # Conv2d(k=3, s=2), VALID
    return oh1, ow1, ph, pw, oh2, ow2


def _round_up(v, m):
    return ((v + m - 1) // m) * m


# ------------------------------ fused kernel ------------------------------- #
def _fused_forward_kernel(patches_ref, task_ref, w1_ref, b1_ref, w2_ref,
                          b2_ref, wc_ref, wtask_ref, bfc1_ref, wfc2_ref,
                          bfc2_ref, out_ref, *, n_batch, n_pos, blk):
    """Whole forward pass, fully batched; all intermediates VMEM/vreg resident.

    patches_ref: (4, 9*blk, K1p) conv1 im2col, row = tap*blk + pos*n_batch + n.
    """
    f32 = jnp.float32
    n_par = patches_ref.shape[0]          # 4 pooling parities (2x2 window)
    n_tap = w2_ref.shape[0]               # 9 conv2 taps (3x3 kernel)

    # ---- conv1: one GEMM per pooling parity; MaxPool2d(2) fused as the max
    # over the four parities; bias + ReLU commute with the max.
    w1 = w1_ref[...]
    acc = jnp.dot(patches_ref[0], w1, preferred_element_type=f32)
    for par in range(1, n_par):
        acc = jnp.maximum(
            acc, jnp.dot(patches_ref[par], w1, preferred_element_type=f32))
    col = jnp.maximum(acc + b1_ref[...], 0.0)        # (9*blk, 16)

    # ---- conv2: `col` already holds the pooled activations in conv2's
    # tap-major window order, so each tap is one aligned (blk,16)@(16,32) GEMM.
    c2 = jnp.dot(col[0:blk], w2_ref[0], preferred_element_type=f32)
    for k in range(1, n_tap):
        c2 = c2 + jnp.dot(col[k * blk:(k + 1) * blk], w2_ref[k],
                          preferred_element_type=f32)
    c2 = jnp.maximum(c2 + b2_ref[...], 0.0)          # (blk, 32), row = p*N + n

    # ---- flatten + concat(task) + fc1 + ReLU (batched over the whole batch).
    h = jnp.dot(task_ref[...], wtask_ref[...], preferred_element_type=f32)
    for p in range(n_pos):
        h = h + jnp.dot(c2[p * n_batch:(p + 1) * n_batch], wc_ref[p],
                        preferred_element_type=f32)
    h = jnp.maximum(h + bfc1_ref[...], 0.0)          # (N, 128)

    # ---- fc2
    out_ref[...] = (jnp.dot(h, wfc2_ref[...], preferred_element_type=f32)
                    + bfc2_ref[...])


# ------------------------------ input packing ------------------------------ #
def _build_col_patches(x, H, W, blk):
    """im2col of the raw input, ordered for the fused conv1->pool->conv2 path.

    Output (4, 9*blk, K1p); row = k2*blk + p*N + n holds, for conv2 tap
    k2=(k2i,k2j), conv2 output position p=(oy,ox) and sample n, the conv1 3x3
    patch at pooled position (2*oy+k2i, 2*ox+k2j); the leading axis is the 2x2
    max-pool parity (di,dj).  So conv1+pool = max over parity of patches @ W1,
    already in conv2's window order (no in-kernel gather needed).
    """
    # TODO(synk): patch extraction stays as a single XLA gather on the raw
    # input; an in-kernel version would need stride-2/4 lane reads.
    N, Cin = x.shape[0], x.shape[1]
    _, _, _, _, oh2, ow2 = _conv_sizes(H, W)
    n_pos = oh2 * ow2
    F = Cin * 9
    k1p = _round_up(F, 8)

    par_di = np.repeat(np.arange(2), 2)              # parity = di*2 + dj
    par_dj = np.tile(np.arange(2), 2)
    t_k2i = np.repeat(np.arange(3), 3)               # conv2 tap = k2i*3 + k2j
    t_k2j = np.tile(np.arange(3), 3)
    p_oy = np.repeat(np.arange(oh2), ow2)            # conv2 pos = oy*ow2 + ox
    p_ox = np.tile(np.arange(ow2), oh2)
    f_ci = np.repeat(np.arange(Cin), 9)              # conv1 feat = ci*9+ki*3+kj
    f_ki = np.tile(np.repeat(np.arange(3), 3), Cin)
    f_kj = np.tile(np.arange(3), 3 * Cin)

    # source pixel = x[n, ci, 8*oy + 4*k2i + 2*di + ki, 8*ox + 4*k2j + 2*dj + kj]
    h_idx = (8 * p_oy[None, None, :, None] + 4 * t_k2i[None, :, None, None]
             + 2 * par_di[:, None, None, None] + f_ki[None, None, None, :])
    w_idx = (8 * p_ox[None, None, :, None] + 4 * t_k2j[None, :, None, None]
             + 2 * par_dj[:, None, None, None] + f_kj[None, None, None, :])
    c_idx = np.broadcast_to(f_ci[None, None, None, :], h_idx.shape)

    g = x[:, c_idx, h_idx, w_idx]                    # (N, 4, 9, n_pos, F)
    g = jnp.transpose(g, (1, 2, 3, 0, 4))            # (4, 9, n_pos, N, F)
    g = g.reshape(4, 9, n_pos * N, F)
    g = jnp.pad(g, ((0, 0), (0, 0), (0, blk - n_pos * N), (0, k1p - F)))
    return g.reshape(4, 9 * blk, k1p)


# ------------------------------ parameters --------------------------------- #
def init_params(key, num_tasks, H, W):
    """Torch-layout parameters (same init scheme / shapes as the nn.Module)."""
    def u(k, shape, fan_in):
        bound = 1.0 / np.sqrt(fan_in)
        return jax.random.uniform(k, shape, jnp.float32, -bound, bound)

    ks = jax.random.split(key, 8)
    _, _, _, _, oh2, ow2 = _conv_sizes(H, W)
    flat = 32 * oh2 * ow2
    return {
        "w1": u(ks[0], (16, 3, 3, 3), 3 * 9),
        "b1": u(ks[1], (16,), 3 * 9),
        "w2": u(ks[2], (32, 16, 3, 3), 16 * 9),
        "b2": u(ks[3], (32,), 16 * 9),
        "fc1_w": u(ks[4], (128, flat + num_tasks), flat + num_tasks),
        "fc1_b": u(ks[5], (128,), flat + num_tasks),
        "fc2_w": u(ks[6], (2, 128), 128),
        "fc2_b": u(ks[7], (2,), 128),
    }


def pack_params(params, num_tasks, H, W):
    """One-time weight layout work, hoisted out of the forward path."""
    _, _, _, _, oh2, ow2 = _conv_sizes(H, W)
    n_pos = oh2 * ow2
    cin = params["w1"].shape[1]
    k1, k1p = cin * 9, _round_up(cin * 9, 8)
    ntp = _round_up(num_tasks, 8)

    # conv1: (K, Cout) with K padded to a sublane multiple.
    w1 = jnp.pad(params["w1"].reshape(16, k1).T, ((0, k1p - k1), (0, 0)))
    # conv2: per-tap (Cin, Cout) matrices, tap index = k2i*3 + k2j.
    w2 = params["w2"].transpose(2, 3, 1, 0).reshape(9, 16, 32)

    fc1_w = params["fc1_w"]
    # fc1 conv part regrouped to (spatial_pos, c2, 128) so the kernel never has
    # to flatten/transpose the conv2 output.
    wc = fc1_w[:, :32 * n_pos].reshape(128, 32, n_pos).transpose(2, 1, 0)
    wtask = jnp.pad(fc1_w[:, 32 * n_pos:].T, ((0, ntp - num_tasks), (0, 0)))

    return {
        "w1": w1, "b1": params["b1"].reshape(1, 16),
        "w2": w2, "b2": params["b2"].reshape(1, 32),
        "wc": wc, "wtask": wtask, "bfc1": params["fc1_b"].reshape(1, 128),
        "wfc2": params["fc2_w"].T, "bfc2": params["fc2_b"].reshape(1, 2),
    }


# ------------------------------ forward pass ------------------------------- #
@functools.partial(jax.jit, static_argnums=(3, 4))
def forward(packed, x, task_id, H, W):
    N = x.shape[0]
    _, _, _, _, oh2, ow2 = _conv_sizes(H, W)
    n_pos = oh2 * ow2
    blk = _round_up(N * n_pos, 8)                    # aligned per-tap block
    patches = _build_col_patches(x, H, W, blk)
    ntp = packed["wtask"].shape[0]
    task_pad = jnp.pad(task_id.astype(jnp.float32),
                       ((0, 0), (0, ntp - task_id.shape[1])))

    inputs = (patches, task_pad, packed["w1"], packed["b1"], packed["w2"],
              packed["b2"], packed["wc"], packed["wtask"], packed["bfc1"],
              packed["wfc2"], packed["bfc2"])

    k1p = patches.shape[-1]
    flops = 2 * (4 * 9 * blk * k1p * 16              # conv1 (4 parities)
                 + 9 * blk * 16 * 32                 # conv2 taps
                 + n_pos * N * 32 * 128              # fc1 conv part
                 + N * ntp * 128                     # fc1 task part
                 + N * 128 * 2)                      # fc2
    bytes_accessed = sum(int(np.prod(a.shape)) * 4 for a in inputs) + N * 2 * 4

    kernel = functools.partial(_fused_forward_kernel,
                               n_batch=N, n_pos=n_pos, blk=blk)
    return pl.pallas_call(
        kernel,
        out_shape=jax.ShapeDtypeStruct((N, 2), jnp.float32),
        in_specs=[_VMEM] * len(inputs),
        out_specs=_VMEM,
        cost_estimate=pl.CostEstimate(flops=flops, transcendentals=0,
                                      bytes_accessed=bytes_accessed),
    )(*inputs)


# Pure-JAX reference for correctness checking (uses torch-layout params).
def reference(params, x, task_id):
    dn = ("NCHW", "OIHW", "NCHW")
    h = jax.lax.conv_general_dilated(x, params["w1"], (2, 2), "VALID",
                                     dimension_numbers=dn)
    h = jnp.maximum(h + params["b1"][None, :, None, None], 0.0)
    h = jax.lax.reduce_window(h, -jnp.inf, jax.lax.max,
                              (1, 1, 2, 2), (1, 1, 2, 2), "VALID")
    h = jax.lax.conv_general_dilated(h, params["w2"], (2, 2), "VALID",
                                     dimension_numbers=dn)
    h = jnp.maximum(h + params["b2"][None, :, None, None], 0.0)
    h = h.reshape(h.shape[0], -1)
    h = jnp.concatenate([h, task_id], axis=1)
    h = jnp.maximum(h @ params["fc1_w"].T + params["fc1_b"], 0.0)
    return h @ params["fc2_w"].T + params["fc2_b"]


if __name__ == "__main__":
    NUM_TASKS, H, W, BATCH = 4, 32, 32, 2

    key = jax.random.PRNGKey(0)
    k_param, k_x, k_t = jax.random.split(key, 3)
    params = init_params(k_param, NUM_TASKS, H, W)
    packed = pack_params(params, NUM_TASKS, H, W)   # hoisted, done once

    x = jax.random.normal(k_x, (BATCH, 3, H, W), jnp.float32)
    task_idx = jax.random.randint(k_t, (BATCH,), 0, NUM_TASKS)
    task_id = jax.nn.one_hot(task_idx, NUM_TASKS, dtype=jnp.float32)

    out = jax.block_until_ready(forward(packed, x, task_id, H, W))
    ref = jax.block_until_ready(reference(params, x, task_id))

    assert out.shape == (BATCH, 2)
    np.testing.assert_allclose(np.asarray(out), np.asarray(ref),
                               rtol=1e-4, atol=1e-4)
    print("KERNEL_OK")
</pallas_src>

<mosaic_0001>
module attributes {stable_mosaic.version = 11 : i64} {
  func.func @_fused_forward_kernel(%arg0: memref<4x216x32xf32, #tpu.memory_space<vmem>>, %arg1: memref<2x8xf32, #tpu.memory_space<vmem>>, %arg2: memref<32x16xf32, #tpu.memory_space<vmem>>, %arg3: memref<1x16xf32, #tpu.memory_space<vmem>>, %arg4: memref<9x16x32xf32, #tpu.memory_space<vmem>>, %arg5: memref<1x32xf32, #tpu.memory_space<vmem>>, %arg6: memref<9x32x128xf32, #tpu.memory_space<vmem>>, %arg7: memref<8x128xf32, #tpu.memory_space<vmem>>, %arg8: memref<1x128xf32, #tpu.memory_space<vmem>>, %arg9: memref<128x2xf32, #tpu.memory_space<vmem>>, %arg10: memref<1x2xf32, #tpu.memory_space<vmem>>, %arg11: memref<2x2xf32, #tpu.memory_space<vmem>>) attributes {dimension_semantics = [], scalar_prefetch = 0 : i64, scratch_operands = 0 : i64, tpu.core_type = #tpu.core_type<tc>} {
    %c0 = arith.constant 0 : index
    %c0_0 = arith.constant 0 : index
    %0 = vector.load %arg2[%c0, %c0_0] : memref<32x16xf32, #tpu.memory_space<vmem>>, vector<32x16xf32>
    %c0_1 = arith.constant 0 : index
    %c0_2 = arith.constant 0 : index
    %c0_3 = arith.constant 0 : index
    %1 = vector.load %arg0[%c0_1, %c0_2, %c0_3] : memref<4x216x32xf32, #tpu.memory_space<vmem>>, vector<1x216x32xf32>
    %2 = vector.shape_cast %1 : vector<1x216x32xf32> to vector<216x32xf32>
    %cst = arith.constant dense<0.000000e+00> : vector<216x16xf32>
    %3 = tpu.matmul %2, %0, %cst {dimension_numbers = #tpu.dot_dimension_numbers<[1], [0], [0], [1], [0, 0, 1, 1], [], []>} : vector<216x32xf32>, vector<32x16xf32>, vector<216x16xf32> -> vector<216x16xf32>
    %c1 = arith.constant 1 : index
    %c0_4 = arith.constant 0 : index
    %c0_5 = arith.constant 0 : index
    %4 = vector.load %arg0[%c1, %c0_4, %c0_5] : memref<4x216x32xf32, #tpu.memory_space<vmem>>, vector<1x216x32xf32>
    %5 = vector.shape_cast %4 : vector<1x216x32xf32> to vector<216x32xf32>
    %cst_6 = arith.constant dense<0.000000e+00> : vector<216x16xf32>
    %6 = tpu.matmul %5, %0, %cst_6 {dimension_numbers = #tpu.dot_dimension_numbers<[1], [0], [0], [1], [0, 0, 1, 1], [], []>} : vector<216x32xf32>, vector<32x16xf32>, vector<216x16xf32> -> vector<216x16xf32>
    %7 = arith.maximumf %3, %6 : vector<216x16xf32>
    %c2 = arith.constant 2 : index
    %c0_7 = arith.constant 0 : index
    %c0_8 = arith.constant 0 : index
    %8 = vector.load %arg0[%c2, %c0_7, %c0_8] : memref<4x216x32xf32, #tpu.memory_space<vmem>>, vector<1x216x32xf32>
    %9 = vector.shape_cast %8 : vector<1x216x32xf32> to vector<216x32xf32>
    %cst_9 = arith.constant dense<0.000000e+00> : vector<216x16xf32>
    %10 = tpu.matmul %9, %0, %cst_9 {dimension_numbers = #tpu.dot_dimension_numbers<[1], [0], [0], [1], [0, 0, 1, 1], [], []>} : vector<216x32xf32>, vector<32x16xf32>, vector<216x16xf32> -> vector<216x16xf32>
    %11 = arith.maximumf %7, %10 : vector<216x16xf32>
    %c3 = arith.constant 3 : index
    %c0_10 = arith.constant 0 : index
    %c0_11 = arith.constant 0 : index
    %12 = vector.load %arg0[%c3, %c0_10, %c0_11] : memref<4x216x32xf32, #tpu.memory_space<vmem>>, vector<1x216x32xf32>
    %13 = vector.shape_cast %12 : vector<1x216x32xf32> to vector<216x32xf32>
    %cst_12 = arith.constant dense<0.000000e+00> : vector<216x16xf32>
    %14 = tpu.matmul %13, %0, %cst_12 {dimension_numbers = #tpu.dot_dimension_numbers<[1], [0], [0], [1], [0, 0, 1, 1], [], []>} : vector<216x32xf32>, vector<32x16xf32>, vector<216x16xf32> -> vector<216x16xf32>
    %15 = arith.maximumf %11, %14 : vector<216x16xf32>
    %c0_13 = arith.constant 0 : index
    %c0_14 = arith.constant 0 : index
    %16 = vector.load %arg3[%c0_13, %c0_14] : memref<1x16xf32, #tpu.memory_space<vmem>>, vector<1x16xf32>
    %17 = vector.broadcast %16 : vector<1x16xf32> to vector<216x16xf32>
    %18 = arith.addf %15, %17 : vector<216x16xf32>
    %cst_15 = arith.constant 0.000000e+00 : f32
    %19 = vector.broadcast %cst_15 : f32 to vector<216x16xf32>
    %20 = arith.maximumf %18, %19 : vector<216x16xf32>
    %21 = vector.extract_strided_slice %20 {offsets = [0, 0], sizes = [24, 16], strides = [1, 1]} : vector<216x16xf32> to vector<24x16xf32>
    %c0_16 = arith.constant 0 : index
    %c0_17 = arith.constant 0 : index
    %c0_18 = arith.constant 0 : index
    %22 = vector.load %arg4[%c0_16, %c0_17, %c0_18] : memref<9x16x32xf32, #tpu.memory_space<vmem>>, vector<1x16x32xf32>
    %23 = vector.shape_cast %22 : vector<1x16x32xf32> to vector<16x32xf32>
    %cst_19 = arith.constant dense<0.000000e+00> : vector<24x32xf32>
    %24 = tpu.matmul %21, %23, %cst_19 {dimension_numbers = #tpu.dot_dimension_numbers<[1], [0], [0], [1], [0, 0, 1, 1], [], []>} : vector<24x16xf32>, vector<16x32xf32>, vector<24x32xf32> -> vector<24x32xf32>
    %25 = vector.extract_strided_slice %20 {offsets = [24, 0], sizes = [24, 16], strides = [1, 1]} : vector<216x16xf32> to vector<24x16xf32>
    %c1_20 = arith.constant 1 : index
    %c0_21 = arith.constant 0 : index
    %c0_22 = arith.constant 0 : index
    %26 = vector.load %arg4[%c1_20, %c0_21, %c0_22] : memref<9x16x32xf32, #tpu.memory_space<vmem>>, vector<1x16x32xf32>
    %27 = vector.shape_cast %26 : vector<1x16x32xf32> to vector<16x32xf32>
    %cst_23 = arith.constant dense<0.000000e+00> : vector<24x32xf32>
    %28 = tpu.matmul %25, %27, %cst_23 {dimension_numbers = #tpu.dot_dimension_numbers<[1], [0], [0], [1], [0, 0, 1, 1], [], []>} : vector<24x16xf32>, vector<16x32xf32>, vector<24x32xf32> -> vector<24x32xf32>
    %29 = arith.addf %24, %28 : vector<24x32xf32>
    %30 = vector.extract_strided_slice %20 {offsets = [48, 0], sizes = [24, 16], strides = [1, 1]} : vector<216x16xf32> to vector<24x16xf32>
    %c2_24 = arith.constant 2 : index
    %c0_25 = arith.constant 0 : index
    %c0_26 = arith.constant 0 : index
    %31 = vector.load %arg4[%c2_24, %c0_25, %c0_26] : memref<9x16x32xf32, #tpu.memory_space<vmem>>, vector<1x16x32xf32>
    %32 = vector.shape_cast %31 : vector<1x16x32xf32> to vector<16x32xf32>
    %cst_27 = arith.constant dense<0.000000e+00> : vector<24x32xf32>
    %33 = tpu.matmul %30, %32, %cst_27 {dimension_numbers = #tpu.dot_dimension_numbers<[1], [0], [0], [1], [0, 0, 1, 1], [], []>} : vector<24x16xf32>, vector<16x32xf32>, vector<24x32xf32> -> vector<24x32xf32>
    %34 = arith.addf %29, %33 : vector<24x32xf32>
    %35 = vector.extract_strided_slice %20 {offsets = [72, 0], sizes = [24, 16], strides = [1, 1]} : vector<216x16xf32> to vector<24x16xf32>
    %c3_28 = arith.constant 3 : index
    %c0_29 = arith.constant 0 : index
    %c0_30 = arith.constant 0 : index
    %36 = vector.load %arg4[%c3_28, %c0_29, %c0_30] : memref<9x16x32xf32, #tpu.memory_space<vmem>>, vector<1x16x32xf32>
    %37 = vector.shape_cast %36 : vector<1x16x32xf32> to vector<16x32xf32>
    %cst_31 = arith.constant dense<0.000000e+00> : vector<24x32xf32>
    %38 = tpu.matmul %35, %37, %cst_31 {dimension_numbers = #tpu.dot_dimension_numbers<[1], [0], [0], [1], [0, 0, 1, 1], [], []>} : vector<24x16xf32>, vector<16x32xf32>, vector<24x32xf32> -> vector<24x32xf32>
    %39 = arith.addf %34, %38 : vector<24x32xf32>
    %40 = vector.extract_strided_slice %20 {offsets = [96, 0], sizes = [24, 16], strides = [1, 1]} : vector<216x16xf32> to vector<24x16xf32>
    %c4 = arith.constant 4 : index
    %c0_32 = arith.constant 0 : index
    %c0_33 = arith.constant 0 : index
    %41 = vector.load %arg4[%c4, %c0_32, %c0_33] : memref<9x16x32xf32, #tpu.memory_space<vmem>>, vector<1x16x32xf32>
    %42 = vector.shape_cast %41 : vector<1x16x32xf32> to vector<16x32xf32>
    %cst_34 = arith.constant dense<0.000000e+00> : vector<24x32xf32>
    %43 = tpu.matmul %40, %42, %cst_34 {dimension_numbers = #tpu.dot_dimension_numbers<[1], [0], [0], [1], [0, 0, 1, 1], [], []>} : vector<24x16xf32>, vector<16x32xf32>, vector<24x32xf32> -> vector<24x32xf32>
    %44 = arith.addf %39, %43 : vector<24x32xf32>
    %45 = vector.extract_strided_slice %20 {offsets = [120, 0], sizes = [24, 16], strides = [1, 1]} : vector<216x16xf32> to vector<24x16xf32>
    %c5 = arith.constant 5 : index
    %c0_35 = arith.constant 0 : index
    %c0_36 = arith.constant 0 : index
    %46 = vector.load %arg4[%c5, %c0_35, %c0_36] : memref<9x16x32xf32, #tpu.memory_space<vmem>>, vector<1x16x32xf32>
    %47 = vector.shape_cast %46 : vector<1x16x32xf32> to vector<16x32xf32>
    %cst_37 = arith.constant dense<0.000000e+00> : vector<24x32xf32>
    %48 = tpu.matmul %45, %47, %cst_37 {dimension_numbers = #tpu.dot_dimension_numbers<[1], [0], [0], [1], [0, 0, 1, 1], [], []>} : vector<24x16xf32>, vector<16x32xf32>, vector<24x32xf32> -> vector<24x32xf32>
    %49 = arith.addf %44, %48 : vector<24x32xf32>
    %50 = vector.extract_strided_slice %20 {offsets = [144, 0], sizes = [24, 16], strides = [1, 1]} : vector<216x16xf32> to vector<24x16xf32>
    %c6 = arith.constant 6 : index
    %c0_38 = arith.constant 0 : index
    %c0_39 = arith.constant 0 : index
    %51 = vector.load %arg4[%c6, %c0_38, %c0_39] : memref<9x16x32xf32, #tpu.memory_space<vmem>>, vector<1x16x32xf32>
    %52 = vector.shape_cast %51 : vector<1x16x32xf32> to vector<16x32xf32>
    %cst_40 = arith.constant dense<0.000000e+00> : vector<24x32xf32>
    %53 = tpu.matmul %50, %52, %cst_40 {dimension_numbers = #tpu.dot_dimension_numbers<[1], [0], [0], [1], [0, 0, 1, 1], [], []>} : vector<24x16xf32>, vector<16x32xf32>, vector<24x32xf32> -> vector<24x32xf32>
    %54 = arith.addf %49, %53 : vector<24x32xf32>
    %55 = vector.extract_strided_slice %20 {offsets = [168, 0], sizes = [24, 16], strides = [1, 1]} : vector<216x16xf32> to vector<24x16xf32>
    %c7 = arith.constant 7 : index
    %c0_41 = arith.constant 0 : index
    %c0_42 = arith.constant 0 : index
    %56 = vector.load %arg4[%c7, %c0_41, %c0_42] : memref<9x16x32xf32, #tpu.memory_space<vmem>>, vector<1x16x32xf32>
    %57 = vector.shape_cast %56 : vector<1x16x32xf32> to vector<16x32xf32>
    %cst_43 = arith.constant dense<0.000000e+00> : vector<24x32xf32>
    %58 = tpu.matmul %55, %57, %cst_43 {dimension_numbers = #tpu.dot_dimension_numbers<[1], [0], [0], [1], [0, 0, 1, 1], [], []>} : vector<24x16xf32>, vector<16x32xf32>, vector<24x32xf32> -> vector<24x32xf32>
    %59 = arith.addf %54, %58 : vector<24x32xf32>
    %60 = vector.extract_strided_slice %20 {offsets = [192, 0], sizes = [24, 16], strides = [1, 1]} : vector<216x16xf32> to vector<24x16xf32>
    %c8 = arith.constant 8 : index
    %c0_44 = arith.constant 0 : index
    %c0_45 = arith.constant 0 : index
    %61 = vector.load %arg4[%c8, %c0_44, %c0_45] : memref<9x16x32xf32, #tpu.memory_space<vmem>>, vector<1x16x32xf32>
    %62 = vector.shape_cast %61 : vector<1x16x32xf32> to vector<16x32xf32>
    %cst_46 = arith.constant dense<0.000000e+00> : vector<24x32xf32>
    %63 = tpu.matmul %60, %62, %cst_46 {dimension_numbers = #tpu.dot_dimension_numbers<[1], [0], [0], [1], [0, 0, 1, 1], [], []>} : vector<24x16xf32>, vector<16x32xf32>, vector<24x32xf32> -> vector<24x32xf32>
    %64 = arith.addf %59, %63 : vector<24x32xf32>
    %c0_47 = arith.constant 0 : index
    %c0_48 = arith.constant 0 : index
    %65 = vector.load %arg5[%c0_47, %c0_48] : memref<1x32xf32, #tpu.memory_space<vmem>>, vector<1x32xf32>
    %66 = vector.broadcast %65 : vector<1x32xf32> to vector<24x32xf32>
    %67 = arith.addf %64, %66 : vector<24x32xf32>
    %cst_49 = arith.constant 0.000000e+00 : f32
    %68 = vector.broadcast %cst_49 : f32 to vector<24x32xf32>
    %69 = arith.maximumf %67, %68 : vector<24x32xf32>
    %c0_50 = arith.constant 0 : index
    %c0_51 = arith.constant 0 : index
    %70 = vector.load %arg1[%c0_50, %c0_51] : memref<2x8xf32, #tpu.memory_space<vmem>>, vector<2x8xf32>
    %c0_52 = arith.constant 0 : index
    %c0_53 = arith.constant 0 : index
    %71 = vector.load %arg7[%c0_52, %c0_53] : memref<8x128xf32, #tpu.memory_space<vmem>>, vector<8x128xf32>
    %cst_54 = arith.constant dense<0.000000e+00> : vector<2x128xf32>
    %72 = tpu.matmul %70, %71, %cst_54 {dimension_numbers = #tpu.dot_dimension_numbers<[1], [0], [0], [1], [0, 0, 1, 1], [], []>} : vector<2x8xf32>, vector<8x128xf32>, vector<2x128xf32> -> vector<2x128xf32>
    %73 = vector.extract_strided_slice %69 {offsets = [0, 0], sizes = [2, 32], strides = [1, 1]} : vector<24x32xf32> to vector<2x32xf32>
    %c0_55 = arith.constant 0 : index
    %c0_56 = arith.constant 0 : index
    %c0_57 = arith.constant 0 : index
    %74 = vector.load %arg6[%c0_55, %c0_56, %c0_57] : memref<9x32x128xf32, #tpu.memory_space<vmem>>, vector<1x32x128xf32>
    %75 = vector.shape_cast %74 : vector<1x32x128xf32> to vector<32x128xf32>
    %cst_58 = arith.constant dense<0.000000e+00> : vector<2x128xf32>
    %76 = tpu.matmul %73, %75, %cst_58 {dimension_numbers = #tpu.dot_dimension_numbers<[1], [0], [0], [1], [0, 0, 1, 1], [], []>} : vector<2x32xf32>, vector<32x128xf32>, vector<2x128xf32> -> vector<2x128xf32>
    %77 = arith.addf %72, %76 : vector<2x128xf32>
    %78 = vector.extract_strided_slice %69 {offsets = [2, 0], sizes = [2, 32], strides = [1, 1]} : vector<24x32xf32> to vector<2x32xf32>
    %c1_59 = arith.constant 1 : index
    %c0_60 = arith.constant 0 : index
    %c0_61 = arith.constant 0 : index
    %79 = vector.load %arg6[%c1_59, %c0_60, %c0_61] : memref<9x32x128xf32, #tpu.memory_space<vmem>>, vector<1x32x128xf32>
    %80 = vector.shape_cast %79 : vector<1x32x128xf32> to vector<32x128xf32>
    %cst_62 = arith.constant dense<0.000000e+00> : vector<2x128xf32>
    %81 = tpu.matmul %78, %80, %cst_62 {dimension_numbers = #tpu.dot_dimension_numbers<[1], [0], [0], [1], [0, 0, 1, 1], [], []>} : vector<2x32xf32>, vector<32x128xf32>, vector<2x128xf32> -> vector<2x128xf32>
    %82 = arith.addf %77, %81 : vector<2x128xf32>
    %83 = vector.extract_strided_slice %69 {offsets = [4, 0], sizes = [2, 32], strides = [1, 1]} : vector<24x32xf32> to vector<2x32xf32>
    %c2_63 = arith.constant 2 : index
    %c0_64 = arith.constant 0 : index
    %c0_65 = arith.constant 0 : index
    %84 = vector.load %arg6[%c2_63, %c0_64, %c0_65] : memref<9x32x128xf32, #tpu.memory_space<vmem>>, vector<1x32x128xf32>
    %85 = vector.shape_cast %84 : vector<1x32x128xf32> to vector<32x128xf32>
    %cst_66 = arith.constant dense<0.000000e+00> : vector<2x128xf32>
    %86 = tpu.matmul %83, %85, %cst_66 {dimension_numbers = #tpu.dot_dimension_numbers<[1], [0], [0], [1], [0, 0, 1, 1], [], []>} : vector<2x32xf32>, vector<32x128xf32>, vector<2x128xf32> -> vector<2x128xf32>
    %87 = arith.addf %82, %86 : vector<2x128xf32>
    %88 = vector.extract_strided_slice %69 {offsets = [6, 0], sizes = [2, 32], strides = [1, 1]} : vector<24x32xf32> to vector<2x32xf32>
    %c3_67 = arith.constant 3 : index
    %c0_68 = arith.constant 0 : index
    %c0_69 = arith.constant 0 : index
    %89 = vector.load %arg6[%c3_67, %c0_68, %c0_69] : memref<9x32x128xf32, #tpu.memory_space<vmem>>, vector<1x32x128xf32>
    %90 = vector.shape_cast %89 : vector<1x32x128xf32> to vector<32x128xf32>
    %cst_70 = arith.constant dense<0.000000e+00> : vector<2x128xf32>
    %91 = tpu.matmul %88, %90, %cst_70 {dimension_numbers = #tpu.dot_dimension_numbers<[1], [0], [0], [1], [0, 0, 1, 1], [], []>} : vector<2x32xf32>, vector<32x128xf32>, vector<2x128xf32> -> vector<2x128xf32>
    %92 = arith.addf %87, %91 : vector<2x128xf32>
    %93 = vector.extract_strided_slice %69 {offsets = [8, 0], sizes = [2, 32], strides = [1, 1]} : vector<24x32xf32> to vector<2x32xf32>
    %c4_71 = arith.constant 4 : index
    %c0_72 = arith.constant 0 : index
    %c0_73 = arith.constant 0 : index
    %94 = vector.load %arg6[%c4_71, %c0_72, %c0_73] : memref<9x32x128xf32, #tpu.memory_space<vmem>>, vector<1x32x128xf32>
    %95 = vector.shape_cast %94 : vector<1x32x128xf32> to vector<32x128xf32>
    %cst_74 = arith.constant dense<0.000000e+00> : vector<2x128xf32>
    %96 = tpu.matmul %93, %95, %cst_74 {dimension_numbers = #tpu.dot_dimension_numbers<[1], [0], [0], [1], [0, 0, 1, 1], [], []>} : vector<2x32xf32>, vector<32x128xf32>, vector<2x128xf32> -> vector<2x128xf32>
    %97 = arith.addf %92, %96 : vector<2x128xf32>
    %98 = vector.extract_strided_slice %69 {offsets = [10, 0], sizes = [2, 32], strides = [1, 1]} : vector<24x32xf32> to vector<2x32xf32>
    %c5_75 = arith.constant 5 : index
    %c0_76 = arith.constant 0 : index
    %c0_77 = arith.constant 0 : index
    %99 = vector.load %arg6[%c5_75, %c0_76, %c0_77] : memref<9x32x128xf32, #tpu.memory_space<vmem>>, vector<1x32x128xf32>
    %100 = vector.shape_cast %99 : vector<1x32x128xf32> to vector<32x128xf32>
    %cst_78 = arith.constant dense<0.000000e+00> : vector<2x128xf32>
    %101 = tpu.matmul %98, %100, %cst_78 {dimension_numbers = #tpu.dot_dimension_numbers<[1], [0], [0], [1], [0, 0, 1, 1], [], []>} : vector<2x32xf32>, vector<32x128xf32>, vector<2x128xf32> -> vector<2x128xf32>
    %102 = arith.addf %97, %101 : vector<2x128xf32>
    %103 = vector.extract_strided_slice %69 {offsets = [12, 0], sizes = [2, 32], strides = [1, 1]} : vector<24x32xf32> to vector<2x32xf32>
    %c6_79 = arith.constant 6 : index
    %c0_80 = arith.constant 0 : index
    %c0_81 = arith.constant 0 : index
    %104 = vector.load %arg6[%c6_79, %c0_80, %c0_81] : memref<9x32x128xf32, #tpu.memory_space<vmem>>, vector<1x32x128xf32>
    %105 = vector.shape_cast %104 : vector<1x32x128xf32> to vector<32x128xf32>
    %cst_82 = arith.constant dense<0.000000e+00> : vector<2x128xf32>
    %106 = tpu.matmul %103, %105, %cst_82 {dimension_numbers = #tpu.dot_dimension_numbers<[1], [0], [0], [1], [0, 0, 1, 1], [], []>} : vector<2x32xf32>, vector<32x128xf32>, vector<2x128xf32> -> vector<2x128xf32>
    %107 = arith.addf %102, %106 : vector<2x128xf32>
    %108 = vector.extract_strided_slice %69 {offsets = [14, 0], sizes = [2, 32], strides = [1, 1]} : vector<24x32xf32> to vector<2x32xf32>
    %c7_83 = arith.constant 7 : index
    %c0_84 = arith.constant 0 : index
    %c0_85 = arith.constant 0 : index
    %109 = vector.load %arg6[%c7_83, %c0_84, %c0_85] : memref<9x32x128xf32, #tpu.memory_space<vmem>>, vector<1x32x128xf32>
    %110 = vector.shape_cast %109 : vector<1x32x128xf32> to vector<32x128xf32>
    %cst_86 = arith.constant dense<0.000000e+00> : vector<2x128xf32>
    %111 = tpu.matmul %108, %110, %cst_86 {dimension_numbers = #tpu.dot_dimension_numbers<[1], [0], [0], [1], [0, 0, 1, 1], [], []>} : vector<2x32xf32>, vector<32x128xf32>, vector<2x128xf32> -> vector<2x128xf32>
    %112 = arith.addf %107, %111 : vector<2x128xf32>
    %113 = vector.extract_strided_slice %69 {offsets = [16, 0], sizes = [2, 32], strides = [1, 1]} : vector<24x32xf32> to vector<2x32xf32>
    %c8_87 = arith.constant 8 : index
    %c0_88 = arith.constant 0 : index
    %c0_89 = arith.constant 0 : index
    %114 = vector.load %arg6[%c8_87, %c0_88, %c0_89] : memref<9x32x128xf32, #tpu.memory_space<vmem>>, vector<1x32x128xf32>
    %115 = vector.shape_cast %114 : vector<1x32x128xf32> to vector<32x128xf32>
    %cst_90 = arith.constant dense<0.000000e+00> : vector<2x128xf32>
    %116 = tpu.matmul %113, %115, %cst_90 {dimension_numbers = #tpu.dot_dimension_numbers<[1], [0], [0], [1], [0, 0, 1, 1], [], []>} : vector<2x32xf32>, vector<32x128xf32>, vector<2x128xf32> -> vector<2x128xf32>
    %117 = arith.addf %112, %116 : vector<2x128xf32>
    %c0_91 = arith.constant 0 : index
    %c0_92 = arith.constant 0 : index
    %118 = vector.load %arg8[%c0_91, %c0_92] : memref<1x128xf32, #tpu.memory_space<vmem>>, vector<1x128xf32>
    %119 = vector.broadcast %118 : vector<1x128xf32> to vector<2x128xf32>
    %120 = arith.addf %117, %119 : vector<2x128xf32>
    %cst_93 = arith.constant 0.000000e+00 : f32
    %121 = vector.broadcast %cst_93 : f32 to vector<2x128xf32>
    %122 = arith.maximumf %120, %121 : vector<2x128xf32>
    %c0_94 = arith.constant 0 : index
    %c0_95 = arith.constant 0 : index
    %123 = vector.load %arg9[%c0_94, %c0_95] : memref<128x2xf32, #tpu.memory_space<vmem>>, vector<128x2xf32>
    %cst_96 = arith.constant dense<0.000000e+00> : vector<2x2xf32>
    %124 = tpu.matmul %122, %123, %cst_96 {dimension_numbers = #tpu.dot_dimension_numbers<[1], [0], [0], [1], [0, 0, 1, 1], [], []>} : vector<2x128xf32>, vector<128x2xf32>, vector<2x2xf32> -> vector<2x2xf32>
    %c0_97 = arith.constant 0 : index
    %c0_98 = arith.constant 0 : index
    %125 = vector.load %arg10[%c0_97, %c0_98] : memref<1x2xf32, #tpu.memory_space<vmem>>, vector<1x2xf32>
    %126 = vector.broadcast %125 : vector<1x2xf32> to vector<2x2xf32>
    %127 = arith.addf %124, %126 : vector<2x2xf32>
    %c0_99 = arith.constant 0 : index
    %c0_100 = arith.constant 0 : index
    %128 = vector.load %arg11[%c0_99, %c0_100] : memref<2x2xf32, #tpu.memory_space<vmem>>, vector<2x2xf32>
    tpu.vector_store %arg11[%c0_99, %c0_100], %127 {strides = array<i32>} : memref<2x2xf32, #tpu.memory_space<vmem>>, vector<2x2xf32>,
    return
  }
}

</mosaic_0001>

<bundles_post_ra>
// kernel: forward.1
= control target key start
LH: loop header
LB: loop body
LE: loop exit
PB: predicated region body
PF: predicated region fallthrough
CT: control target
= control target key end

     0   :  { %v5959_v3 = vmov 0.0|0.0   ;;  %vm4471_vm0 = vmmov 0   ;;  %v5961_v6 = vmov 0.0   ;;  %vm70_vm1 = vcmask 261120   ;;  %s5947_s0 = inlined_call_operand.vmem [shape: f32[4,216,32], index: 0, kind: input, shape index: {}]   ;;  %s5948_s1 = inlined_call_operand.vmem [shape: f32[2,8], index: 1, kind: input, shape index: {}]   ;;  %s5949_s2 = inlined_call_operand.vmem [shape: f32[32,16], index: 2, kind: input, shape index: {}]   ;;  %s5950_s3 = inlined_call_operand.vmem [shape: f32[1,16], index: 3, kind: input, shape index: {}]   ;;  %s5951_s4 = inlined_call_operand.vmem [shape: f32[9,16,32], index: 4, kind: input, shape index: {}]   ;;  %s5952_s5 = inlined_call_operand.vmem [shape: f32[1,32], index: 5, kind: input, shape index: {}]   ;;  %s5953_s6 = inlined_call_operand.vmem [shape: f32[9,32,128], index: 6, kind: input, shape index: {}]   ;;  %s5954_s7 = inlined_call_operand.vmem [shape: f32[8,128], index: 7, kind: input, shape index: {}]   ;;  %s5955_s8 = inlined_call_operand.vmem [shape: f32[1,128], index: 8, kind: input, shape index: {}]   ;;  %s5956_s9 = inlined_call_operand.vmem [shape: f32[128,2], index: 9, kind: input, shape index: {}]   ;;  %s5957_s10 = inlined_call_operand.vmem [shape: f32[1,2], index: 10, kind: input, shape index: {}]   ;;  %s5958_s11 = inlined_call_operand.hbm [shape: f32[2,2], index: 11, kind: output, shape index: {}]  }
   0x1   :  { %v39_v0 = vld [vmem:[%s5949_s2] sm:$0xff]  ;;  %v40_v1 = vld [vmem:[%s5949_s2 + $0x8] sm:$0xff]  ;;  %v41_v2 = vld [vmem:[%s5949_s2 + $0x10] sm:$0xff]  ;;  %4309 = vmatprep.subr.bf16.mxu0 %v5959_v3  ;;  %4438 = vmatprep.subr.bf16.mxu1 %v5959_v3 }
   0x2   :  { %v4310_v4 = vpack.c.bf16 %v40_v1, %v39_v0  ;;  %v42_v5 = vld [vmem:[%s5949_s2 + $0x18] sm:$0xff]  ;;  %3705 = vmatprep.mubr.msk.f32.mxu0 %vm4471_vm0, %v5961_v6  ;;  %3774 = vmatprep.mubr.msk.f32.mxu1 %vm4471_vm0, %v5961_v6  ;;  %v43_v8 = vld [vmem:[%s5947_s0] sm:$0xff]  ;;  %v44_v10 = vld [vmem:[%s5947_s0 + $0x8] sm:$0xff] }
   0x3   :  { %v4313_v7 = vpack.c.bf16 %v42_v5, %v41_v2  ;;  %v66_v9 = vld [vmem:[%s5947_s0 + $0xb8] sm:$0xff]  ;;  %v67_v11 = vld [vmem:[%s5947_s0 + $0xc0] sm:$0xff]  ;;  %v45_v12 = vld [vmem:[%s5947_s0 + $0x10] sm:$0xff] }
   0x4   :  { %4311 = vmatpush3.bf16.msra.mxu0 %v4310_v4  ;;  %4440 = vmatpush3.bf16.msra.mxu1 %v4310_v4  ;;  %v68_v13 = vld [vmem:[%s5947_s0 + $0xc8] sm:$0xff]  ;;  %v46_v14 = vld [vmem:[%s5947_s0 + $0x18] sm:$0xff]  ;;  %v69_v15 = vld [vmem:[%s5947_s0 + $0xd0] sm:$0xff] }
   0x5   :  { %4312 = vmatprep.subr.bf16.mxu0 %v5959_v3  ;;  %4439 = vmatprep.subr.bf16.mxu1 %v5959_v3  ;;  %v47_v16 = vld [vmem:[%s5947_s0 + $0x20] sm:$0xff]  ;;  %v3213_v17 = vld [vmem:[%s5947_s0 + $0xd8] sm:$0xff] }
   0x8   :  { %4314 = vmatpush3.bf16.msra.mxu0 %v4313_v7  ;;  %4441 = vmatpush3.bf16.msra.mxu1 %v4313_v7 }
   0x9   :  { %4315 = vmatprep.subr.bf16.mxu1 %v5959_v3  ;;  %4321 = vmatprep.subr.bf16.mxu0 %v5959_v3 }
   0xb   :  { %3706 = vmatmul.mubr.msk.f32.vlgmr.msra.gmra.mrb[0].mxu0 %vm70_vm1, %v43_v8  ;;  %3775 = vmatmul.mubr.msk.f32.vlgmr.msra.gmra.mrb[0].mxu1 %vm70_vm1, %v66_v9 }
   0xc   :  { %4317 = vmatpush3.bf16.msra.mxu1 %v4310_v4  ;;  %3708 = vmatprep.mubr.msk.f32.mxu0 %vm4471_vm0, %v5961_v6 }
   0xd   :  { %3777 = vmatprep.mubr.msk.f32.mxu1 %vm4471_vm0, %v5961_v6  ;;  %4318 = vmatprep.subr.bf16.mxu1 %v5959_v3 }
   0xe   :  { %4323 = vmatpush3.bf16.msra.mxu0 %v4310_v4 }
   0xf   :  { %3709 = vmatmul.mubr.msk.f32.gmra.mrb[2].mxu0 %vm70_vm1, %v44_v10  ;;  %3778 = vmatmul.mubr.msk.f32.gmra.mrb[2].mxu1 %vm70_vm1, %v67_v11 }
  0x10   :  { %3711 = vmatprep.mubr.msk.f32.mxu0 %vm4471_vm0, %v5961_v6  ;;  %3780 = vmatprep.mubr.msk.f32.mxu1 %vm4471_vm0, %v5961_v6 }
  0x11   :  { %4320 = vmatpush3.bf16.msra.mxu1 %v4313_v7  ;;  %4324 = vmatprep.subr.bf16.mxu0 %v5959_v3 }
  0x12   :  { %4327 = vmatprep.subr.bf16.mxu1 %v5959_v3  ;;  %4326 = vmatpush3.bf16.msra.mxu0 %v4313_v7 }
  0x13   :  { %3712 = vmatmul.mubr.msk.f32.gmra.mrb[4].mxu0 %vm70_vm1, %v45_v12  ;;  %3781 = vmatmul.mubr.msk.f32.gmra.mrb[4].mxu1 %vm70_vm1, %v68_v13 }
  0x14   :  { %3714 = vmatprep.mubr.msk.f32.mxu0 %vm4471_vm0, %v5961_v6  ;;  %3783 = vmatprep.mubr.msk.f32.mxu1 %vm4471_vm0, %v5961_v6 }
  0x15   :  { %4333 = vmatprep.subr.bf16.mxu0 %v5959_v3 }
  0x17   :  { %3715 = vmatmul.mubr.msk.f32.gmra.mrb[6].mxu0 %vm70_vm1, %v46_v14  ;;  %3784 = vmatmul.mubr.msk.f32.gmra.mrb[6].mxu1 %vm70_vm1, %v69_v15 }
  0x18   :  { %3717 = vmatprep.mubr.msk.f32.mxu0 %vm4471_vm0, %v5961_v6  ;;  %3794 = vmatprep.mubr.msk.f32.mxu1 %vm4471_vm0, %v5961_v6 }
  0x1b   :  { %3718 = vmatmul.mubr.msk.f32.gmra.mrb[8].mxu0 %vm70_vm1, %v47_v16  ;;  %3795 = vmatmul.mubr.msk.f32.vlgmr.msra.gmra.mrb[8].mxu1 %vm70_vm1, %v3213_v17 }
  0x1c   :  { %16 = vsyncpa [#allocation3], 0  ;;  %4329 = vmatpush3.bf16.msra.mxu1 %v4310_v4  ;;  %3720 = vmatprep.mubr.msk.f32.mxu0 %vm4471_vm0, %v5961_v6  ;;  %v48_v18 = vld [vmem:[%s5947_s0 + $0x28] sm:$0xff]  ;;  %v3214_v19 = vld [vmem:[%s5947_s0 + $0xe0] sm:$0xff]  ;;  %vm1426_vm2 = vcmask 130048   ;;  %vm2362_vm3 = vcmask 64512  }
  0x1d   :  { %3797 = vmatprep.mubr.msk.f32.mxu1 %vm4471_vm0, %v5961_v6  ;;  %4330 = vmatprep.subr.bf16.mxu1 %v5959_v3  ;;  %v49_v20 = vld [vmem:[%s5947_s0 + $0x30] sm:$0xff]  ;;  %v3215_v21 = vld [vmem:[%s5947_s0 + $0xe8] sm:$0xff]  ;;  %v50_v22 = vld [vmem:[%s5947_s0 + $0x38] sm:$0xff]  ;;  %s4473_s22 = smov [#allocation2]   ;;  %vm3170_vm4 = vcmask 9216  }
  0x1e   :  { %v3216_v23 = vld [vmem:[%s5947_s0 + $0xf0] sm:$0xff]  ;;  %v51_v24 = vld [vmem:[%s5947_s0 + $0x40] sm:$0xff]  ;;  %v3217_v25 = vld [vmem:[%s5947_s0 + $0xf8] sm:$0xff]  ;;  %s3178_s23 = sshll.u32 %s4473_s22, 4  ;;  %s3179_s23 = int_to_ptr.vmem [resolvable:$true] %s3178_s23 }
  0x1f   :  { %3721 = vmatmul.mubr.msk.f32.gmra.mrb[10].mxu0 %vm70_vm1, %v48_v18  ;;  %3798 = vmatmul.mubr.msk.f32.gmra.mrb[10].mxu1 %vm70_vm1, %v3214_v19  ;;  %v52_v26 = vld [vmem:[%s5947_s0 + $0x48] sm:$0xff]  ;;  %v3218_v27 = vld [vmem:[%s5947_s0 + $0x100] sm:$0xff]  ;;  %v53_v28 = vld [vmem:[%s5947_s0 + $0x50] sm:$0xff]  ;;  %s4446_s24 = scalar_lea.vmem %s3179_s23, 32  ;;  %p4451_p1 = scmp.lt.s32.totalorder %s3179_s23, %s3179_s23 }
  0x20   :  { %3723 = vmatprep.mubr.msk.f32.mxu0 %vm4471_vm0, %v5961_v6  ;;  %3800 = vmatprep.mubr.msk.f32.mxu1 %vm4471_vm0, %v5961_v6  ;;  %v3219_v29 = vld [vmem:[%s5947_s0 + $0x108] sm:$0xff]  ;;  %v54_v30 = vld [vmem:[%s5947_s0 + $0x58] sm:$0xff]  ;;  %v3220_v31 = vld [vmem:[%s5947_s0 + $0x110] sm:$0xff]  ;;  %p4447_p0 = scmp.ne.s32.totalorder %s3179_s23, %s4446_s24  ;;  %p4452_p2 = scmp.lt.s32.totalorder %s4446_s24, %s4446_s24 }
  0x21   :  { %4332 = vmatpush3.bf16.msra.mxu1 %v4313_v7  ;;  %v55_v32 = vld [vmem:[%s5947_s0 + $0x60] sm:$0xff]  ;;  %v3221_v33 = vld [vmem:[%s5947_s0 + $0x118] sm:$0xff]  ;;  %v56_v34 = vld [vmem:[%s5947_s0 + $0x68] sm:$0xff] }
  0x22   :  { %4336 = vmatprep.subr.bf16.mxu1 %v5959_v3  ;;  %v3222_v35 = vld [vmem:[%s5947_s0 + $0x120] sm:$0xff]  ;;  %v57_v36 = vld [vmem:[%s5947_s0 + $0x70] sm:$0xff]  ;;  %v3223_v37 = vld [vmem:[%s5947_s0 + $0x128] sm:$0xff]  ;;  %p4453_p3 = por %p4452_p2, %p4451_p1 }
  0x23   :  { %3724 = vmatmul.mubr.msk.f32.gmra.mrb[12].mxu0 %vm70_vm1, %v49_v20  ;;  %3801 = vmatmul.mubr.msk.f32.gmra.mrb[12].mxu1 %vm70_vm1, %v3215_v21  ;;  %v58_v38 = vld [vmem:[%s5947_s0 + $0x78] sm:$0xff]  ;;  %v3224_v39 = vld [vmem:[%s5947_s0 + $0x130] sm:$0xff]  ;;  %v59_v40 = vld [vmem:[%s5947_s0 + $0x80] sm:$0xff] }
  0x24   :  { %3726 = vmatprep.mubr.msk.f32.mxu0 %vm4471_vm0, %v5961_v6  ;;  %3803 = vmatprep.mubr.msk.f32.mxu1 %vm4471_vm0, %v5961_v6  ;;  %v3225_v41 = vld [vmem:[%s5947_s0 + $0x138] sm:$0xff]  ;;  %v60_v42 = vld [vmem:[%s5947_s0 + $0x88] sm:$0xff]  ;;  %v3226_v43 = vld [vmem:[%s5947_s0 + $0x140] sm:$0xff]  ;;  %p4454_p4 = pnand %p4453_p3, %p4447_p0 }
  0x25   :  { %v61_v44 = vld [vmem:[%s5947_s0 + $0x90] sm:$0xff]  ;;  %v3227_v45 = vld [vmem:[%s5947_s0 + $0x148] sm:$0xff]  ;;  %v62_v46 = vld [vmem:[%s5947_s0 + $0x98] sm:$0xff] }
  0x26   :  { %v3228_v47 = vld [vmem:[%s5947_s0 + $0x150] sm:$0xff]  ;;  %v63_v48 = vld [vmem:[%s5947_s0 + $0xa0] sm:$0xff]  ;;  %v3229_v49 = vld [vmem:[%s5947_s0 + $0x158] sm:$0xff] }
  0x27   :  { %3727 = vmatmul.mubr.msk.f32.gmra.mrb[14].mxu0 %vm70_vm1, %v50_v22  ;;  %3804 = vmatmul.mubr.msk.f32.gmra.mrb[14].mxu1 %vm70_vm1, %v3216_v23  ;;  %v64_v50 = vld [vmem:[%s5947_s0 + $0xa8] sm:$0xff]  ;;  %v3230_v51 = vld [vmem:[%s5947_s0 + $0x160] sm:$0xff]  ;;  %v65_v52 = vld [vmem:[%s5947_s0 + $0xb0] sm:$0xff] }
  0x28   :  { %3729 = vmatprep.mubr.msk.f32.mxu0 %vm4471_vm0, %v5961_v6  ;;  %3806 = vmatprep.mubr.msk.f32.mxu1 %vm4471_vm0, %v5961_v6  ;;  %v3231_v53 = vld [vmem:[%s5947_s0 + $0x168] sm:$0xff]  ;;  %v3232_v54 = vld [vmem:[%s5947_s0 + $0x170] sm:$0xff]  ;;  %v3233_v56 = vld [vmem:[%s5947_s0 + $0x178] sm:$0xff] }
  0x29   :  { %v3267_v55 = vld [vmem:[%s5947_s0 + $0x1b0] sm:$0xff]  ;;  %v3268_v57 = vld [vmem:[%s5947_s0 + $0x1b8] sm:$0xff]  ;;  %v3234_v58 = vld [vmem:[%s5947_s0 + $0x180] sm:$0xff] }
  0x2a   :  { %v3269_v59 = vld [vmem:[%s5947_s0 + $0x1c0] sm:$0xff]  ;;  %v3235_v60 = vld [vmem:[%s5947_s0 + $0x188] sm:$0xff]  ;;  %v3236_v62 = vld [vmem:[%s5947_s0 + $0x190] sm:$0xff] }
  0x2b   :  { %3730 = vmatmul.mubr.msk.f32.gmra.mrb[16].mxu0 %vm70_vm1, %v51_v24  ;;  %3807 = vmatmul.mubr.msk.f32.gmra.mrb[16].mxu1 %vm70_vm1, %v3217_v25  ;;  %v3270_v61 = vld [vmem:[%s5947_s0 + $0x1c8] sm:$0xff]  ;;  %v3271_v63 = vld [vmem:[%s5947_s0 + $0x1d0] sm:$0xff]  ;;  %v3237_v0 = vld [vmem:[%s5947_s0 + $0x198] sm:$0xff] }
  0x2c   :  { %3732 = vmatprep.mubr.msk.f32.mxu0 %vm4471_vm0, %v5961_v6  ;;  %3809 = vmatprep.mubr.msk.f32.mxu1 %vm4471_vm0, %v5961_v6  ;;  %v3272_v1 = vld [vmem:[%s5947_s0 + $0x1d8] sm:$0xff]  ;;  %v3238_v2 = vld [vmem:[%s5947_s0 + $0x1a0] sm:$0xff]  ;;  %v3239_v5 = vld [vmem:[%s5947_s0 + $0x1a8] sm:$0xff] }
  0x2d   :  { %v3273_v4 = vld [vmem:[%s5947_s0 + $0x1e0] sm:$0xff]  ;;  %v3274_v7 = vld [vmem:[%s5947_s0 + $0x1e8] sm:$0xff]  ;;  %v3275_v8 = vld [vmem:[%s5947_s0 + $0x1f0] sm:$0xff] }
  0x2e   :  { %v3321_v9 = vld [vmem:[%s5947_s0 + $0x288] sm:$0xff]  ;;  %v3276_v10 = vld [vmem:[%s5947_s0 + $0x1f8] sm:$0xff]  ;;  %v3322_v11 = vld [vmem:[%s5947_s0 + $0x290] sm:$0xff] }
  0x2f   :  { %3733 = vmatmul.mubr.msk.f32.gmra.mrb[18].mxu0 %vm70_vm1, %v52_v26  ;;  %3810 = vmatmul.mubr.msk.f32.gmra.mrb[18].mxu1 %vm70_vm1, %v3218_v27  ;;  %v3277_v12 = vld [vmem:[%s5947_s0 + $0x200] sm:$0xff]  ;;  %v3323_v13 = vld [vmem:[%s5947_s0 + $0x298] sm:$0xff]  ;;  %v3278_v14 = vld [vmem:[%s5947_s0 + $0x208] sm:$0xff] }
  0x30   :  { %3735 = vmatprep.mubr.msk.f32.mxu0 %vm4471_vm0, %v5961_v6  ;;  %3812 = vmatprep.mubr.msk.f32.mxu1 %vm4471_vm0, %v5961_v6  ;;  %v3324_v15 = vld [vmem:[%s5947_s0 + $0x2a0] sm:$0xff]  ;;  %v3279_v16 = vld [vmem:[%s5947_s0 + $0x210] sm:$0xff]  ;;  %v3325_v17 = vld [vmem:[%s5947_s0 + $0x2a8] sm:$0xff] }
  0x31   :  { %v3280_v18 = vld [vmem:[%s5947_s0 + $0x218] sm:$0xff]  ;;  %v3326_v19 = vld [vmem:[%s5947_s0 + $0x2b0] sm:$0xff]  ;;  %v3281_v20 = vld [vmem:[%s5947_s0 + $0x220] sm:$0xff] }
  0x32   :  { %v3327_v21 = vld [vmem:[%s5947_s0 + $0x2b8] sm:$0xff]  ;;  %v3282_v22 = vld [vmem:[%s5947_s0 + $0x228] sm:$0xff]  ;;  %v3328_v23 = vld [vmem:[%s5947_s0 + $0x2c0] sm:$0xff] }
  0x33   :  { %3736 = vmatmul.mubr.msk.f32.gmra.mrb[20].mxu0 %vm70_vm1, %v53_v28  ;;  %3813 = vmatmul.mubr.msk.f32.gmra.mrb[20].mxu1 %vm70_vm1, %v3219_v29  ;;  %v3283_v24 = vld [vmem:[%s5947_s0 + $0x230] sm:$0xff]  ;;  %v3329_v25 = vld [vmem:[%s5947_s0 + $0x2c8] sm:$0xff]  ;;  %v3377_v27 = vld [vmem:[%s5951_s4 + $0x18] sm:$0xff] }
  0x34   :  { %3738 = vmatprep.mubr.msk.f32.mxu0 %vm4471_vm0, %v5961_v6  ;;  %3815 = vmatprep.mubr.msk.f32.mxu1 %vm4471_vm0, %v5961_v6  ;;  %v3376_v26 = vld [vmem:[%s5951_s4 + $0x10] sm:$0xff]  ;;  %v3284_v29 = vld [vmem:[%s5947_s0 + $0x238] sm:$0xff] }
  0x35   :  { %v4334_v28 = vpack.c.bf16 %v3377_v27, %v3376_v26 }
  0x37   :  { %3739 = vmatmul.mubr.msk.f32.gmra.mrb[22].mxu0 %vm70_vm1, %v54_v30  ;;  %3816 = vmatmul.mubr.msk.f32.gmra.mrb[22].mxu1 %vm70_vm1, %v3220_v31  ;;  %v3330_v30 = vld [vmem:[%s5947_s0 + $0x2d0] sm:$0xff]  ;;  %v3285_v31 = vld [vmem:[%s5947_s0 + $0x240] sm:$0xff] }
  0x38   :  { %3741 = vmatprep.mubr.msk.f32.mxu0 %vm4471_vm0, %v5961_v6  ;;  %3818 = vmatprep.mubr.msk.f32.mxu1 %vm4471_vm0, %v5961_v6 }
  0x3b   :  { %3742 = vmatmul.mubr.msk.f32.gmra.mrb[24].mxu0 %vm70_vm1, %v55_v32  ;;  %3819 = vmatmul.mubr.msk.f32.gmra.mrb[24].mxu1 %vm70_vm1, %v3221_v33  ;;  %v3331_v32 = vld [vmem:[%s5947_s0 + $0x2d8] sm:$0xff]  ;;  %v1421_v33 = vld [vmem:[%s5951_s4] sm:$0xff] }
  0x3c   :  { %3744 = vmatprep.mubr.msk.f32.mxu0 %vm4471_vm0, %v5961_v6  ;;  %3821 = vmatprep.mubr.msk.f32.mxu1 %vm4471_vm0, %v5961_v6 }
  0x3f   :  { %3745 = vmatmul.mubr.msk.f32.gmra.mrb[26].mxu0 %vm70_vm1, %v56_v34  ;;  %3822 = vmatmul.mubr.msk.f32.gmra.mrb[26].mxu1 %vm70_vm1, %v3222_v35  ;;  %v1422_v34 = vld [vmem:[%s5951_s4 + $0x8] sm:$0xff] }
  0x40   :  { %3747 = vmatprep.mubr.msk.f32.mxu0 %vm4471_vm0, %v5961_v6  ;;  %3824 = vmatprep.mubr.msk.f32.mxu1 %vm4471_vm0, %v5961_v6  ;;  %v3286_v35 = vld [vmem:[%s5947_s0 + $0x248] sm:$0xff] }
  0x43   :  { %3748 = vmatmul.mubr.msk.f32.gmra.mrb[28].mxu0 %vm70_vm1, %v57_v36  ;;  %3825 = vmatmul.mubr.msk.f32.gmra.mrb[28].mxu1 %vm70_vm1, %v3223_v37  ;;  %v3332_v36 = vld [vmem:[%s5947_s0 + $0x2e0] sm:$0xff]  ;;  %v4337_v37 = vpack.c.bf16 %v1422_v34, %v1421_v33 }
  0x44   :  { %3750 = vmatprep.mubr.msk.f32.mxu0 %vm4471_vm0, %v5961_v6  ;;  %3827 = vmatprep.mubr.msk.f32.mxu1 %vm4471_vm0, %v5961_v6 }
  0x47   :  { %3751 = vmatmul.mubr.msk.f32.gmra.mrb[30].mxu0 %vm70_vm1, %v58_v38  ;;  %3828 = vmatmul.mubr.msk.f32.gmra.mrb[30].mxu1 %vm70_vm1, %v3224_v39  ;;  %v3287_v38 = vld [vmem:[%s5947_s0 + $0x250] sm:$0xff]  ;;  %v3333_v39 = vld [vmem:[%s5947_s0 + $0x2e8] sm:$0xff] }
  0x48   :  { %3753 = vmatprep.mubr.msk.f32.mxu0 %vm4471_vm0, %v5961_v6  ;;  %3830 = vmatprep.mubr.msk.f32.mxu1 %vm4471_vm0, %v5961_v6 }
  0x4b   :  { %3754 = vmatmul.mubr.msk.f32.gmra.mrb[32].mxu0 %vm70_vm1, %v59_v40  ;;  %3831 = vmatmul.mubr.msk.f32.gmra.mrb[32].mxu1 %vm70_vm1, %v3225_v41  ;;  %v3288_v40 = vld [vmem:[%s5947_s0 + $0x258] sm:$0xff]  ;;  %v3334_v41 = vld [vmem:[%s5947_s0 + $0x2f0] sm:$0xff] }
  0x4c   :  { %3756 = vmatprep.mubr.msk.f32.mxu0 %vm4471_vm0, %v5961_v6  ;;  %3833 = vmatprep.mubr.msk.f32.mxu1 %vm4471_vm0, %v5961_v6 }
  0x4f   :  { %3757 = vmatmul.mubr.msk.f32.gmra.mrb[34].mxu0 %vm70_vm1, %v60_v42  ;;  %3834 = vmatmul.mubr.msk.f32.gmra.mrb[34].mxu1 %vm70_vm1, %v3226_v43  ;;  %v3289_v42 = vld [vmem:[%s5947_s0 + $0x260] sm:$0xff]  ;;  %v3335_v43 = vld [vmem:[%s5947_s0 + $0x2f8] sm:$0xff] }
  0x50   :  { %3759 = vmatprep.mubr.msk.f32.mxu0 %vm4471_vm0, %v5961_v6  ;;  %3836 = vmatprep.mubr.msk.f32.mxu1 %vm4471_vm0, %v5961_v6 }
  0x53   :  { %3760 = vmatmul.mubr.msk.f32.gmra.mrb[36].mxu0 %vm70_vm1, %v61_v44  ;;  %3837 = vmatmul.mubr.msk.f32.gmra.mrb[36].mxu1 %vm70_vm1, %v3227_v45  ;;  %v3290_v44 = vld [vmem:[%s5947_s0 + $0x268] sm:$0xff]  ;;  %v3336_v45 = vld [vmem:[%s5947_s0 + $0x300] sm:$0xff] }
  0x54   :  { %3762 = vmatprep.mubr.msk.f32.mxu0 %vm4471_vm0, %v5961_v6  ;;  %3839 = vmatprep.mubr.msk.f32.mxu1 %vm4471_vm0, %v5961_v6 }
  0x57   :  { %3763 = vmatmul.mubr.msk.f32.gmra.mrb[38].mxu0 %vm70_vm1, %v62_v46  ;;  %3840 = vmatmul.mubr.msk.f32.gmra.mrb[38].mxu1 %vm70_vm1, %v3228_v47  ;;  %v3291_v46 = vld [vmem:[%s5947_s0 + $0x270] sm:$0xff]  ;;  %v3337_v47 = vld [vmem:[%s5947_s0 + $0x308] sm:$0xff] }
  0x58   :  { %3765 = vmatprep.mubr.msk.f32.mxu0 %vm4471_vm0, %v5961_v6  ;;  %3842 = vmatprep.mubr.msk.f32.mxu1 %vm4471_vm0, %v5961_v6 }
  0x5b   :  { %3766 = vmatmul.mubr.msk.f32.gmra.mrb[40].mxu0 %vm70_vm1, %v63_v48  ;;  %3843 = vmatmul.mubr.msk.f32.gmra.mrb[40].mxu1 %vm70_vm1, %v3229_v49  ;;  %v3292_v48 = vld [vmem:[%s5947_s0 + $0x278] sm:$0xff]  ;;  %v3338_v49 = vld [vmem:[%s5947_s0 + $0x310] sm:$0xff] }
  0x5c   :  { %3768 = vmatprep.mubr.msk.f32.mxu0 %vm4471_vm0, %v5961_v6  ;;  %3845 = vmatprep.mubr.msk.f32.mxu1 %vm4471_vm0, %v5961_v6 }
  0x5f   :  { %3769 = vmatmul.mubr.msk.f32.gmra.mrb[42].mxu0 %vm70_vm1, %v64_v50  ;;  %3846 = vmatmul.mubr.msk.f32.gmra.mrb[42].mxu1 %vm70_vm1, %v3230_v51  ;;  %v3293_v50 = vld [vmem:[%s5947_s0 + $0x280] sm:$0xff]  ;;  %v3339_v51 = vld [vmem:[%s5947_s0 + $0x318] sm:$0xff] }
  0x60   :  { %3771 = vmatprep.mubr.msk.f32.mxu0 %vm4471_vm0, %v5961_v6  ;;  %3848 = vmatprep.mubr.msk.f32.mxu1 %vm4471_vm0, %v5961_v6 }
  0x63   :  { %3772 = vmatmul.mubr.msk.f32.gmra.mrb[44].mxu0 %vm70_vm1, %v65_v52  ;;  %3849 = vmatmul.mubr.msk.f32.gmra.mrb[44].mxu1 %vm70_vm1, %v3231_v53  ;;  %v3340_v52 = vld [vmem:[%s5947_s0 + $0x320] sm:$0xff]  ;;  %v3341_v53 = vld [vmem:[%s5947_s0 + $0x328] sm:$0xff] }
  0x64   :  { %3851 = vmatprep.mubr.msk.f32.mxu1 %vm4471_vm0, %v5961_v6  ;;  %3883 = vmatprep.mubr.msk.f32.mxu0 %vm4471_vm0, %v5961_v6 }
  0x67   :  { %3852 = vmatmul.mubr.msk.f32.gmra.mrb[46].mxu1 %vm70_vm1, %v3232_v54  ;;  %3884 = vmatmul.mubr.msk.f32.vlgmr.msra.gmra.mrb[46].mxu0 %vm70_vm1, %v3267_v55  ;;  %v3342_v54 = vld [vmem:[%s5947_s0 + $0x330] sm:$0xff]  ;;  %v3343_v55 = vld [vmem:[%s5947_s0 + $0x338] sm:$0xff] }
  0x68   :  { %3854 = vmatprep.mubr.msk.f32.mxu1 %vm4471_vm0, %v5961_v6  ;;  %3886 = vmatprep.mubr.msk.f32.mxu0 %vm4471_vm0, %v5961_v6 }
  0x69   :  { %4335 = vmatpush3.bf16.msra.mxu0 %v4334_v28 }
  0x6a   :  { %4339 = vmatprep.subr.bf16.mxu0 %v5959_v3 }
  0x6b   :  { %3855 = vmatmul.mubr.msk.f32.gmra.mrb[48].mxu1 %vm70_vm1, %v3233_v56  ;;  %3887 = vmatmul.mubr.msk.f32.gmra.mrb[48].mxu0 %vm70_vm1, %v3268_v57 }
  0x6c   :  { %3857 = vmatprep.mubr.msk.f32.mxu1 %vm4471_vm0, %v5961_v6  ;;  %3889 = vmatprep.mubr.msk.f32.mxu0 %vm4471_vm0, %v5961_v6 }
  0x6f   :  { %3858 = vmatmul.mubr.msk.f32.gmra.mrb[50].mxu1 %vm70_vm1, %v3234_v58  ;;  %3890 = vmatmul.mubr.msk.f32.gmra.mrb[50].mxu0 %vm70_vm1, %v3269_v59 }
  0x70   :  { %3860 = vmatprep.mubr.msk.f32.mxu1 %vm4471_vm0, %v5961_v6  ;;  %3892 = vmatprep.mubr.msk.f32.mxu0 %vm4471_vm0, %v5961_v6 }
  0x73   :  { %3861 = vmatmul.mubr.msk.f32.gmra.mrb[52].mxu1 %vm70_vm1, %v3235_v60  ;;  %3893 = vmatmul.mubr.msk.f32.gmra.mrb[52].mxu0 %vm70_vm1, %v3270_v61  ;;  %v3344_v60 = vld [vmem:[%s5947_s0 + $0x340] sm:$0xff] }
  0x74   :  { %3863 = vmatprep.mubr.msk.f32.mxu1 %vm4471_vm0, %v5961_v6  ;;  %3895 = vmatprep.mubr.msk.f32.mxu0 %vm4471_vm0, %v5961_v6 }
  0x77   :  { %3864 = vmatmul.mubr.msk.f32.gmra.mrb[54].mxu1 %vm70_vm1, %v3236_v62  ;;  %3896 = vmatmul.mubr.msk.f32.gmra.mrb[54].mxu0 %vm70_vm1, %v3271_v63 }
  0x78   :  { %3866 = vmatprep.mubr.msk.f32.mxu1 %vm4471_vm0, %v5961_v6  ;;  %3898 = vmatprep.mubr.msk.f32.mxu0 %vm4471_vm0, %v5961_v6 }
  0x7b   :  { %3867 = vmatmul.mubr.msk.f32.gmra.mrb[56].mxu1 %vm70_vm1, %v3237_v0  ;;  %3899 = vmatmul.mubr.msk.f32.gmra.mrb[56].mxu0 %vm70_vm1, %v3272_v1  ;;  %v3345_v1 = vld [vmem:[%s5947_s0 + $0x348] sm:$0xff] }
  0x7c   :  { %3869 = vmatprep.mubr.msk.f32.mxu1 %vm4471_vm0, %v5961_v6  ;;  %3901 = vmatprep.mubr.msk.f32.mxu0 %vm4471_vm0, %v5961_v6 }
  0x7f   :  { %3870 = vmatmul.mubr.msk.f32.gmra.mrb[58].mxu1 %vm70_vm1, %v3238_v2  ;;  %3902 = vmatmul.mubr.msk.f32.gmra.mrb[58].mxu0 %vm70_vm1, %v3273_v4 }
  0x80   :  { %3872 = vmatprep.mubr.msk.f32.mxu1 %vm4471_vm0, %v5961_v6  ;;  %3904 = vmatprep.mubr.msk.f32.mxu0 %vm4471_vm0, %v5961_v6 }
  0x83   :  { %3873 = vmatmul.mubr.msk.f32.gmra.mrb[60].mxu1 %vm70_vm1, %v3239_v5  ;;  %3905 = vmatmul.mubr.msk.f32.gmra.mrb[60].mxu0 %vm70_vm1, %v3274_v7 }
  0x84   :  { %3907 = vmatprep.mubr.msk.f32.mxu0 %vm4471_vm0, %v5961_v6  ;;  %3972 = vmatprep.mubr.msk.f32.mxu1 %vm4471_vm0, %v5961_v6 }
  0x87   :  { %3908 = vmatmul.mubr.msk.f32.gmra.mrb[62].mxu0 %vm70_vm1, %v3275_v8  ;;  %3973 = vmatmul.mubr.msk.f32.vlgmr.msra.gmra.mrb[62].mxu1 %vm70_vm1, %v3321_v9  ;;  %v3346_v8 = vld [vmem:[%s5947_s0 + $0x350] sm:$0xff] }
  0x88   :  { %3910 = vmatprep.mubr.msk.f32.mxu0 %vm4471_vm0, %v5961_v6  ;;  %3975 = vmatprep.mubr.msk.f32.mxu1 %vm4471_vm0, %v5961_v6 }
  0x89   :  { %4338 = vmatpush3.bf16.msra.mxu1 %v4337_v37 }
  0x8a   :  { %4342 = vmatprep.subr.bf16.mxu1 %v5959_v3 }
  0x8b   :  { %3911 = vmatmul.mubr.msk.f32.gmra.mrb[64].mxu0 %vm70_vm1, %v3276_v10  ;;  %3976 = vmatmul.mubr.msk.f32.gmra.mrb[64].mxu1 %vm70_vm1, %v3322_v11 }
  0x8c   :  { %3913 = vmatprep.mubr.msk.f32.mxu0 %vm4471_vm0, %v5961_v6  ;;  %3978 = vmatprep.mubr.msk.f32.mxu1 %vm4471_vm0, %v5961_v6 }
  0x8f   :  { %3914 = vmatmul.mubr.msk.f32.gmra.mrb[66].mxu0 %vm70_vm1, %v3277_v12  ;;  %3979 = vmatmul.mubr.msk.f32.gmra.mrb[66].mxu1 %vm70_vm1, %v3323_v13  ;;  %v3347_v13 = vld [vmem:[%s5947_s0 + $0x358] sm:$0xff] }
  0x90   :  { %3916 = vmatprep.mubr.msk.f32.mxu0 %vm4471_vm0, %v5961_v6  ;;  %3981 = vmatprep.mubr.msk.f32.mxu1 %vm4471_vm0, %v5961_v6 }
  0x93   :  { %3917 = vmatmul.mubr.msk.f32.gmra.mrb[68].mxu0 %vm70_vm1, %v3278_v14  ;;  %3982 = vmatmul.mubr.msk.f32.gmra.mrb[68].mxu1 %vm70_vm1, %v3324_v15 }
  0x94   :  { %3919 = vmatprep.mubr.msk.f32.mxu0 %vm4471_vm0, %v5961_v6  ;;  %3984 = vmatprep.mubr.msk.f32.mxu1 %vm4471_vm0, %v5961_v6 }
  0x97   :  { %3920 = vmatmul.mubr.msk.f32.gmra.mrb[70].mxu0 %vm70_vm1, %v3279_v16  ;;  %3985 = vmatmul.mubr.msk.f32.gmra.mrb[70].mxu1 %vm70_vm1, %v3325_v17 }
  0x98   :  { %3922 = vmatprep.mubr.msk.f32.mxu0 %vm4471_vm0, %v5961_v6  ;;  %3987 = vmatprep.mubr.msk.f32.mxu1 %vm4471_vm0, %v5961_v6 }
  0x9b   :  { %3923 = vmatmul.mubr.msk.f32.gmra.mrb[72].mxu0 %vm70_vm1, %v3280_v18  ;;  %3988 = vmatmul.mubr.msk.f32.gmra.mrb[72].mxu1 %vm70_vm1, %v3326_v19 }
  0x9c   :  { %3925 = vmatprep.mubr.msk.f32.mxu0 %vm4471_vm0, %v5961_v6  ;;  %3990 = vmatprep.mubr.msk.f32.mxu1 %vm4471_vm0, %v5961_v6 }
  0x9f   :  { %3926 = vmatmul.mubr.msk.f32.gmra.mrb[74].mxu0 %vm70_vm1, %v3281_v20  ;;  %3991 = vmatmul.mubr.msk.f32.gmra.mrb[74].mxu1 %vm70_vm1, %v3327_v21 }
  0xa0   :  { %3928 = vmatprep.mubr.msk.f32.mxu0 %vm4471_vm0, %v5961_v6  ;;  %3993 = vmatprep.mubr.msk.f32.mxu1 %vm4471_vm0, %v5961_v6 }
  0xa3   :  { %3929 = vmatmul.mubr.msk.f32.gmra.mrb[76].mxu0 %vm70_vm1, %v3282_v22  ;;  %3994 = vmatmul.mubr.msk.f32.gmra.mrb[76].mxu1 %vm70_vm1, %v3328_v23 }
  0xa4   :  { %3931 = vmatprep.mubr.msk.f32.mxu0 %vm4471_vm0, %v5961_v6  ;;  %3996 = vmatprep.mubr.msk.f32.mxu1 %vm4471_vm0, %v5961_v6 }
  0xa7   :  { %3932 = vmatmul.mubr.msk.f32.gmra.mrb[78].mxu0 %vm70_vm1, %v3283_v24  ;;  %3997 = vmatmul.mubr.msk.f32.gmra.mrb[78].mxu1 %vm70_vm1, %v3329_v25 }
  0xa8   :  { %3934 = vmatprep.mubr.msk.f32.mxu0 %vm4471_vm0, %v5961_v6  ;;  %3999 = vmatprep.mubr.msk.f32.mxu1 %vm4471_vm0, %v5961_v6 }
  0xab   :  { %3935 = vmatmul.mubr.msk.f32.gmra.mrb[80].mxu0 %vm70_vm1, %v3284_v29  ;;  %4000 = vmatmul.mubr.msk.f32.gmra.mrb[80].mxu1 %vm70_vm1, %v3330_v30 }
  0xac   :  { %3937 = vmatprep.mubr.msk.f32.mxu0 %vm4471_vm0, %v5961_v6  ;;  %4002 = vmatprep.mubr.msk.f32.mxu1 %vm4471_vm0, %v5961_v6 }
  0xaf   :  { %3938 = vmatmul.mubr.msk.f32.gmra.mrb[82].mxu0 %vm70_vm1, %v3285_v31  ;;  %4003 = vmatmul.mubr.msk.f32.gmra.mrb[82].mxu1 %vm70_vm1, %v3331_v32 }
  0xb0   :  { %3940 = vmatprep.mubr.msk.f32.mxu0 %vm4471_vm0, %v5961_v6  ;;  %4005 = vmatprep.mubr.msk.f32.mxu1 %vm4471_vm0, %v5961_v6 }
  0xb3   :  { %3941 = vmatmul.mubr.msk.f32.gmra.mrb[84].mxu0 %vm70_vm1, %v3286_v35  ;;  %4006 = vmatmul.mubr.msk.f32.gmra.mrb[84].mxu1 %vm70_vm1, %v3332_v36 }
  0xb4   :  { %3943 = vmatprep.mubr.msk.f32.mxu0 %vm4471_vm0, %v5961_v6  ;;  %4008 = vmatprep.mubr.msk.f32.mxu1 %vm4471_vm0, %v5961_v6 }
  0xb7   :  { %3944 = vmatmul.mubr.msk.f32.gmra.mrb[86].mxu0 %vm70_vm1, %v3287_v38  ;;  %4009 = vmatmul.mubr.msk.f32.gmra.mrb[86].mxu1 %vm70_vm1, %v3333_v39 }
  0xb8   :  { %3946 = vmatprep.mubr.msk.f32.mxu0 %vm4471_vm0, %v5961_v6  ;;  %4011 = vmatprep.mubr.msk.f32.mxu1 %vm4471_vm0, %v5961_v6 }
  0xbb   :  { %3947 = vmatmul.mubr.msk.f32.gmra.mrb[88].mxu0 %vm70_vm1, %v3288_v40  ;;  %4012 = vmatmul.mubr.msk.f32.gmra.mrb[88].mxu1 %vm70_vm1, %v3334_v41 }
  0xbc   :  { %3949 = vmatprep.mubr.msk.f32.mxu0 %vm4471_vm0, %v5961_v6  ;;  %4014 = vmatprep.mubr.msk.f32.mxu1 %vm4471_vm0, %v5961_v6 }
  0xbf   :  { %3950 = vmatmul.mubr.msk.f32.gmra.mrb[90].mxu0 %vm70_vm1, %v3289_v42  ;;  %4015 = vmatmul.mubr.msk.f32.gmra.mrb[90].mxu1 %vm70_vm1, %v3335_v43 }
  0xc0   :  { %3952 = vmatprep.mubr.msk.f32.mxu0 %vm4471_vm0, %v5961_v6  ;;  %4017 = vmatprep.mubr.msk.f32.mxu1 %vm4471_vm0, %v5961_v6 }
  0xc3   :  { %3953 = vmatmul.mubr.msk.f32.gmra.mrb[92].mxu0 %vm70_vm1, %v3290_v44  ;;  %4018 = vmatmul.mubr.msk.f32.gmra.mrb[92].mxu1 %vm70_vm1, %v3336_v45 }
  0xc4   :  { %3955 = vmatprep.mubr.msk.f32.mxu0 %vm4471_vm0, %v5961_v6  ;;  %4020 = vmatprep.mubr.msk.f32.mxu1 %vm4471_vm0, %v5961_v6 }
  0xc7   :  { %3956 = vmatmul.mubr.msk.f32.gmra.mrb[94].mxu0 %vm70_vm1, %v3291_v46  ;;  %4021 = vmatmul.mubr.msk.f32.gmra.mrb[94].mxu1 %vm70_vm1, %v3337_v47 }
  0xc8   :  { %3958 = vmatprep.mubr.msk.f32.mxu0 %vm4471_vm0, %v5961_v6  ;;  %4023 = vmatprep.mubr.msk.f32.mxu1 %vm4471_vm0, %v5961_v6 }
  0xcb   :  { %3959 = vmatmul.mubr.msk.f32.gmra.mrb[96].mxu0 %vm70_vm1, %v3292_v48  ;;  %4024 = vmatmul.mubr.msk.f32.gmra.mrb[96].mxu1 %vm70_vm1, %v3338_v49 }
  0xcc   :  { %3961 = vmatprep.mubr.msk.f32.mxu0 %vm4471_vm0, %v5961_v6  ;;  %4026 = vmatprep.mubr.msk.f32.mxu1 %vm4471_vm0, %v5961_v6 }
  0xcf   :  { %3962 = vmatmul.mubr.msk.f32.gmra.mrb[98].mxu0 %vm70_vm1, %v3293_v50  ;;  %4027 = vmatmul.mubr.msk.f32.gmra.mrb[98].mxu1 %vm70_vm1, %v3339_v51 }
  0xd0   :  { %4029 = vmatprep.mubr.msk.f32.mxu1 %vm4471_vm0, %v5961_v6  ;;  %4057 = vmatprep.mubr.msk.f32.mxu0 %vm4471_vm0, %v5961_v6 }
  0xd3   :  { %4030 = vmatmul.mubr.msk.f32.gmra.mrb[100].mxu1 %vm70_vm1, %v3340_v52 }
  0xd4   :  { %4032 = vmatprep.mubr.msk.f32.mxu1 %vm4471_vm0, %v5961_v6 }
  0xd7   :  { %4033 = vmatmul.mubr.msk.f32.gmra.mrb[102].mxu1 %vm70_vm1, %v3341_v53 }
  0xd8   :  { %4035 = vmatprep.mubr.msk.f32.mxu1 %vm4471_vm0, %v5961_v6 }
  0xdb   :  { %4036 = vmatmul.mubr.msk.f32.gmra.mrb[104].mxu1 %vm70_vm1, %v3342_v54 }
  0xdc   :  { %4038 = vmatprep.mubr.msk.f32.mxu1 %vm4471_vm0, %v5961_v6 }
  0xde   :  { %v5197_v56 = vpop.f32.mrb[0].mxu1  ;;  %v5199_v57 = vpop.f32.mrb[0].mxu0 }
  0xdf   :  { %v3776_v58 = vpop.f32.mrb[1].mxu1  ;;  %4039 = vmatmul.mubr.msk.f32.gmra.mrb[106].mxu1 %vm70_vm1, %v3343_v55  ;;  %v3707_v59 = vpop.f32.mrb[1].mxu0 }
  0xe0   :  { %4041 = vmatprep.mubr.msk.f32.mxu1 %vm4471_vm0, %v5961_v6 }
  0xe2   :  { %v5207_v61 = vpop.f32.mrb[2].mxu1  ;;  %v5209_v62 = vpop.f32.mrb[2].mxu0 }
  0xe3   :  { %v3779_v63 = vpop.f32.mrb[3].mxu1  ;;  %4042 = vmatmul.mubr.msk.f32.gmra.mrb[108].mxu1 %vm70_vm1, %v3344_v60  ;;  %v3710_v0 = vpop.f32.mrb[3].mxu0 }
  0xe4   :  { %4044 = vmatprep.mubr.msk.f32.mxu1 %vm4471_vm0, %v5961_v6 }
  0xe6   :  { %v5217_v2 = vpop.f32.mrb[4].mxu1  ;;  %v5219_v4 = vpop.f32.mrb[4].mxu0 }
  0xe7   :  { %v3782_v5 = vpop.f32.mrb[5].mxu1  ;;  %4045 = vmatmul.mubr.msk.f32.gmra.mrb[110].mxu1 %vm70_vm1, %v3345_v1  ;;  %v3713_v7 = vpop.f32.mrb[5].mxu0 }
  0xe8   :  { %4047 = vmatprep.mubr.msk.f32.mxu1 %vm4471_vm0, %v5961_v6 }
  0xea   :  { %v5227_v9 = vpop.f32.mrb[6].mxu1  ;;  %v5229_v10 = vpop.f32.mrb[6].mxu0 }
  0xeb   :  { %v3785_v11 = vpop.f32.mrb[7].mxu1  ;;  %4048 = vmatmul.mubr.msk.f32.gmra.mrb[112].mxu1 %vm70_vm1, %v3346_v8  ;;  %v3716_v12 = vpop.f32.mrb[7].mxu0 }
  0xec   :  { %4050 = vmatprep.mubr.msk.f32.mxu1 %vm4471_vm0, %v5961_v6 }
  0xee   :  { %v5237_v14 = vpop.f32.mrb[8].mxu1  ;;  %v5239_v15 = vpop.f32.mrb[8].mxu0 }
  0xef   :  { %v661_v16 = vmax.f32 %v5199_v57, %v5237_v14  ;;  %v3796_v17 = vpop.f32.mrb[9].mxu1  ;;  %4051 = vmatmul.mubr.msk.f32.gmra.mrb[114].mxu1 %vm70_vm1, %v3347_v13  ;;  %v3719_v18 = vpop.f32.mrb[9].mxu0 }
  0xf0   :  { %4070 = vmatprep.mubr.msk.f32.mxu1 %vm4471_vm0, %v5961_v6 }
  0xf2   :  { %v5246_v19 = vpop.f32.mrb[10].mxu1  ;;  %v5248_v20 = vpop.f32.mrb[10].mxu0 }
  0xf3   :  { %v662_v21 = vmax.f32 %v5209_v62, %v5246_v19  ;;  %v3799_v22 = vpop.f32.mrb[11].mxu1  ;;  %v3722_v23 = vpop.f32.mrb[11].mxu0 }
  0xf6   :  { %v5252_v24 = vpop.f32.mrb[12].mxu1  ;;  %v5254_v25 = vpop.f32.mrb[12].mxu0 }
  0xf7   :  { %v663_v26 = vmax.f32 %v5219_v4, %v5252_v24  ;;  %v3802_v27 = vpop.f32.mrb[13].mxu1  ;;  %v3725_v28 = vpop.f32.mrb[13].mxu0 }
  0xfa   :  { %v5258_v29 = vpop.f32.mrb[14].mxu1  ;;  %v5260_v30 = vpop.f32.mrb[14].mxu0 }
  0xfb   :  { %v664_v31 = vmax.f32 %v5229_v10, %v5258_v29  ;;  %v3805_v32 = vpop.f32.mrb[15].mxu1  ;;  %v3728_v33 = vpop.f32.mrb[15].mxu0 }
  0xfe   :  { %v5264_v34 = vpop.f32.mrb[16].mxu1  ;;  %v5266_v35 = vpop.f32.mrb[16].mxu0 }
  0xff   :  { %v665_v36 = vmax.f32 %v5239_v15, %v5264_v34  ;;  %v3808_v37 = vpop.f32.mrb[17].mxu1  ;;  %v3731_v38 = vpop.f32.mrb[17].mxu0 }
 0x102   :  { %v5270_v39 = vpop.f32.mrb[18].mxu1  ;;  %v5272_v40 = vpop.f32.mrb[18].mxu0 }
 0x103   :  { %v3811_v42 = vpop.f32.mrb[19].mxu1  ;;  %v3734_v43 = vpop.f32.mrb[19].mxu0 }
 0x106   :  { %v5276_v44 = vpop.f32.mrb[20].mxu1  ;;  %v5278_v45 = vpop.f32.mrb[20].mxu0 }
 0x107   :  { %v3814_v47 = vpop.f32.mrb[21].mxu1  ;;  %v3737_v48 = vpop.f32.mrb[21].mxu0 }
 0x10a   :  { %v5282_v49 = vpop.f32.mrb[22].mxu1  ;;  %v5284_v50 = vpop.f32.mrb[22].mxu0 }
 0x10b   :  { %v3817_v52 = vpop.f32.mrb[23].mxu1  ;;  %v3740_v53 = vpop.f32.mrb[23].mxu0 }
 0x10e   :  { %v5288_v54 = vpop.f32.mrb[24].mxu1  ;;  %v5290_v55 = vpop.f32.mrb[24].mxu0 }
 0x10f   :  { %v3820_v59 = vpop.f32.mrb[25].mxu1  ;;  %v3743_v60 = vpop.f32.mrb[25].mxu0 }
 0x112   :  { %v5294_v63 = vpop.f32.mrb[26].mxu1  ;;  %v5296_v0 = vpop.f32.mrb[26].mxu0 }
 0x113   :  { %v3823_v5 = vpop.f32.mrb[27].mxu1  ;;  %v3746_v7 = vpop.f32.mrb[27].mxu0 }
 0x116   :  { %v5300_v8 = vpop.f32.mrb[28].mxu1  ;;  %v5302_v11 = vpop.f32.mrb[28].mxu0 }
 0x117   :  { %v3826_v13 = vpop.f32.mrb[29].mxu1  ;;  %v3749_v17 = vpop.f32.mrb[29].mxu0 }
 0x11a   :  { %v5306_v18 = vpop.f32.mrb[30].mxu1  ;;  %v5308_v22 = vpop.f32.mrb[30].mxu0 }
 0x11b   :  { %v3829_v27 = vpop.f32.mrb[31].mxu1  ;;  %v3752_v28 = vpop.f32.mrb[31].mxu0 }
 0x11e   :  { %v5312_v32 = vpop.f32.mrb[32].mxu1  ;;  %v5314_v33 = vpop.f32.mrb[32].mxu0 }
 0x11f   :  { %v3832_v38 = vpop.f32.mrb[33].mxu1  ;;  %v3755_v42 = vpop.f32.mrb[33].mxu0 }
 0x122   :  { %v5318_v43 = vpop.f32.mrb[34].mxu1  ;;  %v5320_v47 = vpop.f32.mrb[34].mxu0 }
 0x123   :  { %v3835_v52 = vpop.f32.mrb[35].mxu1  ;;  %v3758_v53 = vpop.f32.mrb[35].mxu0 }
 0x126   :  { %v5324_v59 = vpop.f32.mrb[36].mxu1  ;;  %v5326_v60 = vpop.f32.mrb[36].mxu0 }
 0x127   :  { %v3838_v7 = vpop.f32.mrb[37].mxu1  ;;  %v3761_v13 = vpop.f32.mrb[37].mxu0 }
 0x12a   :  { %v5330_v17 = vpop.f32.mrb[38].mxu1  ;;  %v5332_v27 = vpop.f32.mrb[38].mxu0 }
 0x12b   :  { %v3841_v38 = vpop.f32.mrb[39].mxu1  ;;  %v3764_v42 = vpop.f32.mrb[39].mxu0 }
 0x12e   :  { %v5336_v52 = vpop.f32.mrb[40].mxu1  ;;  %v5338_v53 = vpop.f32.mrb[40].mxu0 }
 0x12f   :  { %v3844_v37 = vpop.f32.mrb[41].mxu1  ;;  %v3767_v5 = vpop.f32.mrb[41].mxu0 }
 0x132   :  { %v5342_v7 = vpop.f32.mrb[42].mxu1  ;;  %v5344_v13 = vpop.f32.mrb[42].mxu0 }
 0x133   :  { %v3847_v3 = vpop.f32.mrb[43].mxu1  ;;  %v3770_v28 = vpop.f32.mrb[43].mxu0 }
 0x136   :  { %v5348_v38 = vpop.f32.mrb[44].mxu1  ;;  %v5350_v42 = vpop.f32.mrb[44].mxu0 }
 0x137   :  { %v3850_v6 = vpop.f32.mrb[45].mxu1  ;;  %v3773_v48 = vpop.f32.mrb[45].mxu0 }
 0x13a   :  { %v5354_v37 = vpop.f32.mrb[46].mxu1  ;;  %v863_v5 = vpop.f32.mrb[46].mxu0 }
 0x13b   :  { %v997_v3 = vmax.f32 %v661_v16, %v863_v5  ;;  %v3853_v28 = vpop.f32.mrb[47].mxu1  ;;  %v3885_v23 = vpop.f32.mrb[47].mxu0 }
 0x13e   :  { %v5361_v58 = vpop.f32.mrb[48].mxu1  ;;  %v868_v51 = vpop.f32.mrb[48].mxu0 }
 0x13f   :  { %v681_v12 = vmax.f32 %v5338_v53, %v5361_v58  ;;  %v998_v6 = vmax.f32 %v662_v21, %v868_v51  ;;  %v3856_v48 = vpop.f32.mrb[49].mxu1  ;;  %v3888_v46 = vpop.f32.mrb[49].mxu0 }
 0x142   :  { %v5368_v41 = vpop.f32.mrb[50].mxu1  ;;  %v873_v1 = vpop.f32.mrb[50].mxu0 }
 0x143   :  { %v682_v57 = vmax.f32 %v5344_v13, %v5368_v41  ;;  %v5375_v14 = vmax.f32 %v663_v26, %v873_v1  ;;  %v3859_v16 = vpop.f32.mrb[51].mxu1  ;;  %v3891_v23 = vpop.f32.mrb[51].mxu0 }
 0x146   :  { %v5377_v5 = vpop.f32.mrb[52].mxu1  ;;  %v878_v28 = vpop.f32.mrb[52].mxu0 }
 0x147   :  { %v683_v62 = vmax.f32 %v5350_v42, %v5377_v5  ;;  %v5384_v19 = vmax.f32 %v664_v31, %v878_v28  ;;  %v3862_v21 = vpop.f32.mrb[53].mxu1  ;;  %v3894_v46 = vpop.f32.mrb[53].mxu0  ;;  %v5963_v31 = vmax.f32 %v5248_v20, %v5270_v39 }
 0x14a   :  { %v5386_v51 = vpop.f32.mrb[54].mxu1  ;;  %v883_v4 = vpop.f32.mrb[54].mxu0 }
 0x14b   :  { %v5393_v26 = vmax.f32 %v665_v36, %v883_v4  ;;  %v3865_v1 = vpop.f32.mrb[55].mxu1  ;;  %v3897_v48 = vpop.f32.mrb[55].mxu0  ;;  %v5964_v36 = vmax.f32 %v5254_v25, %v5276_v44  ;;  %v5425_v25 = vld [vmem:[%s5950_s3] ss:$0 sm:$0xff]  ;;  %v5966_v44 = vmax.f32 %v5266_v35, %v5288_v54  ;;  %v5967_v54 = vmax.f32 %v5272_v40, %v5294_v63 }
 0x14c   :  { %v5980_v42 = vmax.f32 %v5197_v56, %v5386_v51 }
 0x14e   :  { %v5395_v16 = vpop.f32.mrb[56].mxu1  ;;  %v888_v10 = vpop.f32.mrb[56].mxu0 }
 0x14f   :  { %v5402_v23 = vmax.f32 %v5963_v31, %v888_v10  ;;  %v3868_v28 = vpop.f32.mrb[57].mxu1  ;;  %v3900_v21 = vpop.f32.mrb[57].mxu0  ;;  %v5965_v10 = vmax.f32 %v5260_v30, %v5282_v49  ;;  %v3389_v30 = vld [vmem:[%s5951_s4 + $0x30] sm:$0xff]  ;;  %v3390_v49 = vld [vmem:[%s5951_s4 + $0x38] sm:$0xff] }
 0x152   :  { %v5404_v46 = vpop.f32.mrb[58].mxu1  ;;  %v893_v15 = vpop.f32.mrb[58].mxu0 }
 0x153   :  { %v5411_v4 = vmax.f32 %v5964_v36, %v893_v15  ;;  %v3871_v1 = vpop.f32.mrb[59].mxu1  ;;  %v3903_v48 = vpop.f32.mrb[59].mxu0 }
 0x156   :  { %v5413_v29 = vpop.f32.mrb[60].mxu1  ;;  %v898_v20 = vpop.f32.mrb[60].mxu0 }
 0x157   :  { %v5420_v31 = vmax.f32 %v5965_v10, %v898_v20  ;;  %v3874_v28 = vpop.f32.mrb[61].mxu1  ;;  %v3906_v21 = vpop.f32.mrb[61].mxu0 }
 0x158   :  { %v4343_v21 = vpack.c.bf16 %v3390_v49, %v3389_v30  ;;  %v5969_v49 = vmax.f32 %v5278_v45, %v5300_v8  ;;  %v5971_v45 = vmax.f32 %v5284_v50, %v5306_v18 }
 0x15a   :  { %v903_v34 = vpop.f32.mrb[62].mxu0  ;;  %v1199_v24 = vpop.f32.mrb[62].mxu1 }
 0x15b   :  { %v5430_v15 = vmax.f32 %v5966_v44, %v903_v34  ;;  %v1333_v36 = vmax.f32 %v997_v3, %v1199_v24  ;;  %v3974_v1 = vpop.f32.mrb[63].mxu1  ;;  %v3909_v48 = vpop.f32.mrb[63].mxu0 }
 0x15d   :  { %v1367_v20 = vadd.f32 %v5425_v25, %v1333_v36  ;;  %v5968_v36 = vmov 0.0  }
 0x15e   :  { %v908_v10 = vpop.f32.mrb[64].mxu0  ;;  %v1204_v28 = vpop.f32.mrb[64].mxu1 }
 0x15f   :  { %v1394_v35 = vmax.f32 %v1367_v20, 0.0  ;;  %v5442_v3 = vmax.f32 %v5967_v54, %v908_v10  ;;  %v1334_v24 = vmax.f32 %v998_v6, %v1204_v28  ;;  %v3977_v34 = vpop.f32.mrb[65].mxu1  ;;  %v3912_v44 = vpop.f32.mrb[65].mxu0  ;;  %v5970_v10 = vmov 0.0|0.0  }
 0x160   :  { %v3384_v34 = vld [vmem:[%s5951_s4 + $0x20] sm:$0xff]  ;;  %v3385_v44 = vld [vmem:[%s5951_s4 + $0x28] sm:$0xff] }
 0x161   :  { %v1368_v1 = vadd.f32 %v5425_v25, %v1334_v24  ;;  %4071 = vmatmul.mubr.msk.f32.vlgmr.msra.gmra.mrb[116].mxu1 %vm1426_vm2, %v1394_v35  ;;  %v4340_v18 = vpack.c.bf16 %v3385_v44, %v3384_v34 }
 0x162   :  { %v913_v48 = vpop.f32.mrb[66].mxu0  ;;  %v1209_v39 = vpop.f32.mrb[66].mxu1  ;;  %4073 = vmatprep.mubr.msk.f32.mxu1 %vm4471_vm0, %v5968_v36  ;;  %4344 = vmatpush3.bf16.msra.mxu1 %v4343_v21 }
 0x163   :  { %v1395_v30 = vmax.f32 %v1368_v1, 0.0  ;;  %v5451_v40 = vmax.f32 %v5969_v49, %v913_v48  ;;  %v1335_v63 = vmax.f32 %v5375_v14, %v1209_v39  ;;  %v3980_v6 = vpop.f32.mrb[67].mxu1  ;;  %v3915_v20 = vpop.f32.mrb[67].mxu0  ;;  %4348 = vmatprep.subr.bf16.mxu1 %v5970_v10 }
 0x165   :  { %v1369_v28 = vadd.f32 %v5425_v25, %v1335_v63  ;;  %4074 = vmatmul.mubr.msk.f32.gmra.mrb[118].mxu1 %vm1426_vm2, %v1395_v30  ;;  %v5972_v30 = vmax.f32 %v5290_v55, %v5312_v32  ;;  %v5973_v55 = vmax.f32 %v5296_v0, %v5318_v43  ;;  %v5974_v0 = vmax.f32 %v5302_v11, %v5324_v59 }
 0x166   :  { %v918_v35 = vpop.f32.mrb[68].mxu0  ;;  %v1214_v54 = vpop.f32.mrb[68].mxu1  ;;  %4076 = vmatprep.mubr.msk.f32.mxu1 %vm4471_vm0, %v5968_v36 }
 0x167   :  { %v1396_v21 = vmax.f32 %v1369_v28, 0.0  ;;  %v5462_v8 = vmax.f32 %v5971_v45, %v918_v35  ;;  %v1336_v14 = vmax.f32 %v5384_v19, %v1214_v54  ;;  %v3983_v39 = vpop.f32.mrb[69].mxu1  ;;  %v3918_v24 = vpop.f32.mrb[69].mxu0 }
 0x169   :  { %v1370_v1 = vadd.f32 %v5425_v25, %v1336_v14  ;;  %4077 = vmatmul.mubr.msk.f32.gmra.mrb[120].mxu1 %vm1426_vm2, %v1396_v21 }
 0x16a   :  { %v923_v48 = vpop.f32.mrb[70].mxu0  ;;  %v1219_v50 = vpop.f32.mrb[70].mxu1  ;;  %4096 = vmatprep.mubr.msk.f32.mxu1 %vm4471_vm0, %v5968_v36 }
 0x16b   :  { %v1397_v19 = vmax.f32 %v1370_v1, 0.0  ;;  %v5478_v49 = vmax.f32 %v5972_v30, %v923_v48  ;;  %v1337_v63 = vmax.f32 %v5393_v26, %v1219_v50  ;;  %v3986_v6 = vpop.f32.mrb[71].mxu1  ;;  %v3921_v20 = vpop.f32.mrb[71].mxu0  ;;  %v3394_v50 = vld [vmem:[%s5951_s4 + $0x40] sm:$0xff] }
 0x16d   :  { %v1371_v28 = vadd.f32 %v5425_v25, %v1337_v63  ;;  %4058 = vmatmul.mubr.msk.f32.vlgmr.msra.gmra.mrb[100].mxu0 %vm1426_vm2, %v1397_v19  ;;  %v5975_v63 = vmax.f32 %v5308_v22, %v5330_v17  ;;  %v5976_v22 = vmax.f32 %v5314_v33, %v5336_v52  ;;  %v5977_v33 = vmax.f32 %v5320_v47, %v5342_v7 }
 0x16e   :  { %v928_v35 = vpop.f32.mrb[72].mxu0  ;;  %v1224_v54 = vpop.f32.mrb[72].mxu1  ;;  %4060 = vmatprep.mubr.msk.f32.mxu0 %vm4471_vm0, %v5968_v36  ;;  %4341 = vmatpush3.bf16.msra.mxu0 %v4340_v18  ;;  %v3395_v18 = vld [vmem:[%s5951_s4 + $0x48] sm:$0xff] }
 0x16f   :  { %v1398_v21 = vmax.f32 %v1371_v28, 0.0  ;;  %v5488_v32 = vmax.f32 %v5973_v55, %v928_v35  ;;  %v1338_v26 = vmax.f32 %v5402_v23, %v1224_v54  ;;  %v3989_v45 = vpop.f32.mrb[73].mxu1  ;;  %v3924_v14 = vpop.f32.mrb[73].mxu0  ;;  %4345 = vmatprep.subr.bf16.mxu0 %v5970_v10  ;;  %v4346_v59 = vpack.c.bf16 %v3395_v18, %v3394_v50 }
 0x171   :  { %v1372_v39 = vadd.f32 %v5425_v25, %v1338_v26  ;;  %4061 = vmatmul.mubr.msk.f32.gmra.mrb[102].mxu0 %vm1426_vm2, %v1398_v21 }
 0x172   :  { %v933_v24 = vpop.f32.mrb[74].mxu0  ;;  %v1229_v34 = vpop.f32.mrb[74].mxu1  ;;  %4063 = vmatprep.mubr.msk.f32.mxu0 %vm4471_vm0, %v5968_v36 }
 0x173   :  { %v1399_v44 = vmax.f32 %v1372_v39, 0.0  ;;  %v5499_v43 = vmax.f32 %v5974_v0, %v933_v24  ;;  %v1339_v23 = vmax.f32 %v5411_v4, %v1229_v34  ;;  %v3992_v1 = vpop.f32.mrb[75].mxu1  ;;  %v3927_v48 = vpop.f32.mrb[75].mxu0 }
 0x174   :  { %v3399_v1 = vld [vmem:[%s5951_s4 + $0x50] sm:$0xff]  ;;  %v3400_v48 = vld [vmem:[%s5951_s4 + $0x58] sm:$0xff] }
 0x175   :  { %v1373_v19 = vadd.f32 %v5425_v25, %v1339_v23  ;;  %4064 = vmatmul.mubr.msk.f32.gmra.mrb[104].mxu0 %vm1426_vm2, %v1399_v44  ;;  %v4349_v7 = vpack.c.bf16 %v3400_v48, %v3399_v1 }
 0x176   :  { %v938_v30 = vpop.f32.mrb[76].mxu0  ;;  %v1234_v11 = vpop.f32.mrb[76].mxu1  ;;  %4083 = vmatprep.mubr.msk.f32.mxu0 %vm4471_vm0, %v5968_v36 }
 0x177   :  { %v1400_v4 = vmax.f32 %v1373_v19, 0.0  ;;  %v5515_v6 = vmax.f32 %v5975_v63, %v938_v30  ;;  %v1340_v20 = vmax.f32 %v5420_v31, %v1234_v11  ;;  %v3995_v28 = vpop.f32.mrb[77].mxu1  ;;  %v3930_v35 = vpop.f32.mrb[77].mxu0  ;;  %v5978_v19 = vmax.f32 %v5326_v60, %v5348_v38 }
 0x178   :  { %v5979_v60 = vmax.f32 %v5332_v27, %v5354_v37 }
 0x179   :  { %v1374_v54 = vadd.f32 %v5425_v25, %v1340_v20  ;;  %4084 = vmatmul.mubr.msk.f32.vlgmr.msra.gmra.mrb[106].mxu0 %vm1426_vm2, %v1400_v4 }
 0x17a   :  { %v943_v21 = vpop.f32.mrb[78].mxu0  ;;  %v1239_v55 = vpop.f32.mrb[78].mxu1  ;;  %4086 = vmatprep.mubr.msk.f32.mxu0 %vm4471_vm0, %v5968_v36  ;;  %4347 = vmatpush3.bf16.msra.mxu0 %v4346_v59 }
 0x17b   :  { %v1401_v26 = vmax.f32 %v1374_v54, 0.0  ;;  %v5525_v17 = vmax.f32 %v5976_v22, %v943_v21  ;;  %v1341_v31 = vmax.f32 %v5430_v15, %v1239_v55  ;;  %v3998_v45 = vpop.f32.mrb[79].mxu1  ;;  %v3933_v14 = vpop.f32.mrb[79].mxu0  ;;  %4351 = vmatprep.subr.bf16.mxu0 %v5970_v10 }
 0x17c   :  { %v3404_v14 = vld [vmem:[%s5951_s4 + $0x60] sm:$0xff] }
 0x17d   :  { %v1375_v39 = vadd.f32 %v5425_v25, %v1341_v31  ;;  %4087 = vmatmul.mubr.msk.f32.gmra.mrb[108].mxu0 %vm1426_vm2, %v1401_v26 }
 0x17e   :  { %v948_v24 = vpop.f32.mrb[80].mxu0  ;;  %v1244_v34 = vpop.f32.mrb[80].mxu1  ;;  %4089 = vmatprep.mubr.msk.f32.mxu0 %vm4471_vm0, %v5968_v36 }
 0x17f   :  { %v1402_v44 = vmax.f32 %v1375_v39, 0.0  ;;  %v5536_v52 = vmax.f32 %v5977_v33, %v948_v24  ;;  %v1342_v15 = vmax.f32 %v5442_v3, %v1244_v34  ;;  %v4001_v0 = vpop.f32.mrb[81].mxu1  ;;  %v3936_v23 = vpop.f32.mrb[81].mxu0  ;;  %v3405_v39 = vld [vmem:[%s5951_s4 + $0x68] sm:$0xff] }
 0x181   :  { %v1376_v50 = vadd.f32 %v5425_v25, %v1342_v15  ;;  %4090 = vmatmul.mubr.msk.f32.gmra.mrb[110].mxu0 %vm1426_vm2, %v1402_v44 }
 0x182   :  { %v953_v18 = vpop.f32.mrb[82].mxu0  ;;  %v1249_v47 = vpop.f32.mrb[82].mxu1  ;;  %4109 = vmatprep.mubr.msk.f32.mxu0 %vm4471_vm0, %v5968_v36 }
 0x183   :  { %v1403_v3 = vmax.f32 %v1376_v50, 0.0  ;;  %v5552_v30 = vmax.f32 %v5978_v19, %v953_v18  ;;  %v1343_v11 = vmax.f32 %v5451_v40, %v1249_v47  ;;  %v4004_v59 = vpop.f32.mrb[83].mxu1  ;;  %v3939_v4 = vpop.f32.mrb[83].mxu0  ;;  %v3409_v19 = vld [vmem:[%s5951_s4 + $0x70] sm:$0xff] }
 0x185   :  { %v1377_v63 = vadd.f32 %v5425_v25, %v1343_v11  ;;  %4097 = vmatmul.mubr.msk.f32.vlgmr.msra.gmra.mrb[122].mxu1 %vm1426_vm2, %v1403_v3  ;;  %v3410_v11 = vld [vmem:[%s5951_s4 + $0x78] sm:$0xff] }
 0x186   :  { %v958_v20 = vpop.f32.mrb[84].mxu0  ;;  %v1254_v28 = vpop.f32.mrb[84].mxu1  ;;  %4099 = vmatprep.mubr.msk.f32.mxu1 %vm4471_vm0, %v5968_v36  ;;  %4350 = vmatpush3.bf16.msra.mxu1 %v4349_v7  ;;  %v4355_v51 = vpack.c.bf16 %v3410_v11, %v3409_v19 }
 0x187   :  { %v1404_v35 = vmax.f32 %v1377_v63, 0.0  ;;  %v5562_v38 = vmax.f32 %v5979_v60, %v958_v20  ;;  %v1344_v40 = vmax.f32 %v5462_v8, %v1254_v28  ;;  %v4007_v54 = vpop.f32.mrb[85].mxu1  ;;  %v3942_v21 = vpop.f32.mrb[85].mxu0  ;;  %4354 = vmatprep.subr.bf16.mxu1 %v5970_v10  ;;  %v5981_v63 = vmax.f32 %v5207_v61, %v5395_v16 }
 0x188   :  { %v5982_v61 = vmax.f32 %v5217_v2, %v5404_v46  ;;  %v5983_v2 = vmax.f32 %v5227_v9, %v5413_v29 }
 0x189   :  { %v1378_v55 = vadd.f32 %v5425_v25, %v1344_v40  ;;  %4100 = vmatmul.mubr.msk.f32.gmra.mrb[124].mxu1 %vm1426_vm2, %v1404_v35 }
 0x18a   :  { %v963_v26 = vpop.f32.mrb[86].mxu0  ;;  %v1259_v22 = vpop.f32.mrb[86].mxu1  ;;  %4102 = vmatprep.mubr.msk.f32.mxu1 %vm4471_vm0, %v5968_v36 }
 0x18b   :  { %v1405_v31 = vmax.f32 %v1378_v55, 0.0  ;;  %v5573_v27 = vmax.f32 %v681_v12, %v963_v26  ;;  %v1345_v37 = vmax.f32 %v5478_v49, %v1259_v22  ;;  %v4010_v8 = vpop.f32.mrb[87].mxu1  ;;  %v3945_v45 = vpop.f32.mrb[87].mxu0  ;;  %v4352_v12 = vpack.c.bf16 %v3405_v39, %v3404_v14  ;;  %v3414_v39 = vld [vmem:[%s5951_s4 + $0x80] sm:$0xff] }
 0x18d   :  { %v1379_v24 = vadd.f32 %v5425_v25, %v1345_v37  ;;  %4103 = vmatmul.mubr.msk.f32.gmra.mrb[126].mxu1 %vm1426_vm2, %v1405_v31 }
 0x18e   :  { %v968_v34 = vpop.f32.mrb[88].mxu0  ;;  %v1264_v58 = vpop.f32.mrb[88].mxu1  ;;  %4122 = vmatprep.mubr.msk.f32.mxu1 %vm4471_vm0, %v5968_v36 }
 0x18f   :  { %v1406_v53 = vmax.f32 %v1379_v24, 0.0  ;;  %v5589_v49 = vmax.f32 %v682_v57, %v968_v34  ;;  %v1346_v44 = vmax.f32 %v5488_v32, %v1264_v58  ;;  %v4013_v33 = vpop.f32.mrb[89].mxu1  ;;  %v3948_v15 = vpop.f32.mrb[89].mxu0  ;;  %v3415_v24 = vld [vmem:[%s5951_s4 + $0x88] sm:$0xff] }
 0x190   :  { %v4358_v9 = vpack.c.bf16 %v3415_v24, %v3414_v39 }
 0x191   :  { %v1380_v0 = vadd.f32 %v5425_v25, %v1346_v44  ;;  %4110 = vmatmul.mubr.msk.f32.vlgmr.msra.gmra.mrb[112].mxu0 %vm1426_vm2, %v1406_v53 }
 0x192   :  { %v973_v23 = vpop.f32.mrb[90].mxu0  ;;  %v1269_v1 = vpop.f32.mrb[90].mxu1  ;;  %4112 = vmatprep.mubr.msk.f32.mxu0 %vm4471_vm0, %v5968_v36  ;;  %4353 = vmatpush3.bf16.msra.mxu0 %v4352_v12 }
 0x193   :  { %v1407_v48 = vmax.f32 %v1380_v0, 0.0  ;;  %v5599_v41 = vmax.f32 %v683_v62, %v973_v23  ;;  %v1347_v13 = vmax.f32 %v5499_v43, %v1269_v1  ;;  %v4016_v57 = vpop.f32.mrb[91].mxu1  ;;  %v3951_v32 = vpop.f32.mrb[91].mxu0  ;;  %4357 = vmatprep.subr.bf16.mxu0 %v5970_v10 }
 0x195   :  { %v1381_v50 = vadd.f32 %v5425_v25, %v1347_v13  ;;  %4113 = vmatmul.mubr.msk.f32.gmra.mrb[114].mxu0 %vm1426_vm2, %v1407_v48 }
 0x196   :  { %v978_v18 = vpop.f32.mrb[92].mxu0  ;;  %v1274_v47 = vpop.f32.mrb[92].mxu1  ;;  %4115 = vmatprep.mubr.msk.f32.mxu0 %vm4471_vm0, %v5968_v36 }
 0x197   :  { %v1408_v7 = vmax.f32 %v1381_v50, 0.0  ;;  %v5610_v5 = vmax.f32 %v5980_v42, %v978_v18  ;;  %v1348_v62 = vmax.f32 %v5515_v6, %v1274_v47  ;;  %v4019_v43 = vpop.f32.mrb[93].mxu1  ;;  %v3954_v3 = vpop.f32.mrb[93].mxu0 }
 0x199   :  { %v1382_v59 = vadd.f32 %v5425_v25, %v1348_v62  ;;  %4116 = vmatmul.mubr.msk.f32.gmra.mrb[116].mxu0 %vm1426_vm2, %v1408_v7 }
 0x19a   :  { %v983_v4 = vpop.f32.mrb[94].mxu0  ;;  %v1279_v56 = vpop.f32.mrb[94].mxu1  ;;  %4135 = vmatprep.mubr.msk.f32.mxu0 %vm4471_vm0, %v5968_v36 }
 0x19b   :  { %v1409_v6 = vmax.f32 %v1382_v59, 0.0  ;;  %v5626_v20 = vmax.f32 %v5981_v63, %v983_v4  ;;  %v1349_v28 = vmax.f32 %v5525_v17, %v1279_v56  ;;  %v4022_v35 = vpop.f32.mrb[95].mxu1  ;;  %v3957_v60 = vpop.f32.mrb[95].mxu0 }
 0x19d   :  { %v1383_v40 = vadd.f32 %v5425_v25, %v1349_v28  ;;  %4123 = vmatmul.mubr.msk.f32.vlgmr.msra.gmra.mrb[128].mxu1 %vm1426_vm2, %v1409_v6 }
 0x19e   :  { %v988_v54 = vpop.f32.mrb[96].mxu0  ;;  %v1284_v21 = vpop.f32.mrb[96].mxu1  ;;  %4125 = vmatprep.mubr.msk.f32.mxu1 %vm4471_vm0, %v5968_v36  ;;  %4356 = vmatpush3.bf16.msra.mxu1 %v4355_v51 }
 0x19f   :  { %v1410_v55 = vmax.f32 %v1383_v40, 0.0  ;;  %v5636_v16 = vmax.f32 %v5982_v61, %v988_v54  ;;  %v1350_v17 = vmax.f32 %v5536_v52, %v1284_v21  ;;  %v4025_v26 = vpop.f32.mrb[97].mxu1  ;;  %v3960_v22 = vpop.f32.mrb[97].mxu0  ;;  %4360 = vmatprep.subr.bf16.mxu1 %v5970_v10  ;;  %v2285_v21 = vld [vmem:[%s5953_s6] sm:$0xff] }
 0x1a0   :  { %v3422_v61 = vld [vmem:[%s5953_s6 + $0x20] sm:$0xff]  ;;  %v2287_v26 = vld [vmem:[%s5953_s6 + $0x10] sm:$0xff]  ;;  %v2288_v22 = vld [vmem:[%s5953_s6 + $0x18] sm:$0xff] }
 0x1a1   :  { %v1384_v31 = vadd.f32 %v5425_v25, %v1350_v17  ;;  %4126 = vmatmul.mubr.msk.f32.gmra.mrb[130].mxu1 %vm1426_vm2, %v1410_v55  ;;  %v2286_v55 = vld [vmem:[%s5953_s6 + $0x8] sm:$0xff] }
 0x1a2   :  { %v993_v37 = vpop.f32.mrb[98].mxu0  ;;  %v1289_v8 = vpop.f32.mrb[98].mxu1  ;;  %4128 = vmatprep.mubr.msk.f32.mxu1 %vm4471_vm0, %v5968_v36 }
 0x1a3   :  { %v1411_v45 = vmax.f32 %v1384_v31, 0.0  ;;  %v5647_v46 = vmax.f32 %v5983_v2, %v993_v37  ;;  %v1351_v52 = vmax.f32 %v5552_v30, %v1289_v8  ;;  %v4028_v14 = vpop.f32.mrb[99].mxu1  ;;  %v3963_v34 = vpop.f32.mrb[99].mxu0  ;;  %v4364_v31 = vpack.c.bf16 %v2288_v22, %v2287_v26  ;;  %v3424_v37 = vld [vmem:[%s5953_s6 + $0x30] sm:$0xff]  ;;  %v3425_v8 = vld [vmem:[%s5953_s6 + $0x38] sm:$0xff] }
 0x1a5   :  { %v1385_v58 = vadd.f32 %v5425_v25, %v1351_v52  ;;  %4129 = vmatmul.mubr.msk.f32.gmra.mrb[132].mxu1 %vm1426_vm2, %v1411_v45  ;;  %v4370_v45 = vpack.c.bf16 %v3425_v8, %v3424_v37 }
 0x1a6   :  { %v1294_v12 = vpop.f32.mrb[100].mxu1  ;;  %4148 = vmatprep.mubr.msk.f32.mxu1 %vm4471_vm0, %v5968_v36 }
 0x1a7   :  { %v1412_v29 = vmax.f32 %v1385_v58, 0.0  ;;  %v1352_v30 = vmax.f32 %v5562_v38, %v1294_v12  ;;  %v4031_v53 = vpop.f32.mrb[101].mxu1 }
 0x1a9   :  { %v1386_v44 = vadd.f32 %v5425_v25, %v1352_v30  ;;  %4136 = vmatmul.mubr.msk.f32.vlgmr.msra.gmra.mrb[118].mxu0 %vm1426_vm2, %v1412_v29 }
 0x1aa   :  { %v1299_v33 = vpop.f32.mrb[102].mxu1  ;;  %4138 = vmatprep.mubr.msk.f32.mxu0 %vm4471_vm0, %v5968_v36  ;;  %4359 = vmatpush3.bf16.msra.mxu0 %v4358_v9 }
 0x1ab   :  { %v1413_v15 = vmax.f32 %v1386_v44, 0.0  ;;  %v1353_v0 = vmax.f32 %v5573_v27, %v1299_v33  ;;  %v4034_v23 = vpop.f32.mrb[103].mxu1  ;;  %4366 = vmatprep.subr.bf16.mxu0 %v5970_v10 }
 0x1ad   :  { %v1387_v1 = vadd.f32 %v5425_v25, %v1353_v0  ;;  %4139 = vmatmul.mubr.msk.f32.gmra.mrb[120].mxu0 %vm1426_vm2, %v1413_v15 }
 0x1ae   :  { %v1304_v38 = vpop.f32.mrb[104].mxu1  ;;  %4141 = vmatprep.mubr.msk.f32.mxu0 %vm4471_vm0, %v5968_v36 }
 0x1af   :  { %v1414_v48 = vmax.f32 %v1387_v1, 0.0  ;;  %v1354_v13 = vmax.f32 %v5589_v49, %v1304_v38  ;;  %v4037_v57 = vpop.f32.mrb[105].mxu1 }
 0x1b1   :  { %v1388_v32 = vadd.f32 %v5425_v25, %v1354_v13  ;;  %4142 = vmatmul.mubr.msk.f32.gmra.mrb[122].mxu0 %vm1426_vm2, %v1414_v48 }
 0x1b2   :  { %v1309_v27 = vpop.f32.mrb[106].mxu1  ;;  %4161 = vmatprep.mubr.msk.f32.mxu0 %vm4471_vm0, %v5968_v36 }
 0x1b3   :  { %v1415_v50 = vmax.f32 %v1388_v32, 0.0  ;;  %v1355_v18 = vmax.f32 %v5599_v41, %v1309_v27  ;;  %v4040_v47 = vpop.f32.mrb[107].mxu1 }
 0x1b5   :  { %v1389_v7 = vadd.f32 %v5425_v25, %v1355_v18  ;;  %4149 = vmatmul.mubr.msk.f32.vlgmr.msra.gmra.mrb[134].mxu1 %vm1426_vm2, %v1415_v50 }
 0x1b6   :  { %v1314_v42 = vpop.f32.mrb[108].mxu1  ;;  %4151 = vmatprep.mubr.msk.f32.mxu1 %vm4471_vm0, %v5968_v36 }
 0x1b7   :  { %v1416_v49 = vmax.f32 %v1389_v7, 0.0  ;;  %v1356_v62 = vmax.f32 %v5610_v5, %v1314_v42  ;;  %v4043_v43 = vpop.f32.mrb[109].mxu1 }
 0x1b9   :  { %v1390_v3 = vadd.f32 %v5425_v25, %v1356_v62  ;;  %4152 = vmatmul.mubr.msk.f32.gmra.mrb[136].mxu1 %vm1426_vm2, %v1416_v49 }
 0x1ba   :  { %v1319_v19 = vpop.f32.mrb[110].mxu1  ;;  %4154 = vmatprep.mubr.msk.f32.mxu1 %vm4471_vm0, %v5968_v36 }
 0x1bb   :  { %v1417_v41 = vmax.f32 %v1390_v3, 0.0  ;;  %v1357_v11 = vmax.f32 %v5626_v20, %v1319_v19  ;;  %v4046_v59 = vpop.f32.mrb[111].mxu1 }
 0x1bd   :  { %v1391_v4 = vadd.f32 %v5425_v25, %v1357_v11  ;;  %4155 = vmatmul.mubr.msk.f32.gmra.mrb[138].mxu1 %vm1426_vm2, %v1417_v41 }
 0x1be   :  { %v1324_v56 = vpop.f32.mrb[112].mxu1  ;;  %4178 = vmatprep.mubr.msk.f32.mxu1 %vm4471_vm0, %v5968_v36 }
 0x1bf   :  { %v1418_v5 = vmax.f32 %v1391_v4, 0.0  ;;  %v1358_v51 = vmax.f32 %v5636_v16, %v1324_v56  ;;  %v4049_v6 = vpop.f32.mrb[113].mxu1  ;;  %v3423_v16 = vld [vmem:[%s5953_s6 + $0x28] sm:$0xff] }
 0x1c0   :  { %v4367_v17 = vpack.c.bf16 %v3423_v16, %v3422_v61 }
 0x1c1   :  { %v1392_v63 = vadd.f32 %v5425_v25, %v1358_v51  ;;  %4162 = vmatmul.mubr.msk.f32.vlgmr.msra.gmra.mrb[124].mxu0 %vm1426_vm2, %v1418_v5 }
 0x1c2   :  { %v1329_v28 = vpop.f32.mrb[114].mxu1  ;;  %4164 = vmatprep.mubr.msk.f32.mxu0 %vm4471_vm0, %v5968_v36  ;;  %4368 = vmatpush3.bf16.msra.mxu0 %v4367_v17 }
 0x1c3   :  { %v1419_v20 = vmax.f32 %v1392_v63, 0.0  ;;  %v1359_v35 = vmax.f32 %v5647_v46, %v1329_v28  ;;  %v4052_v60 = vpop.f32.mrb[115].mxu1  ;;  %4369 = vmatprep.subr.bf16.mxu0 %v5970_v10 }
 0x1c5   :  { %v1393_v40 = vadd.f32 %v5425_v25, %v1359_v35  ;;  %4165 = vmatmul.mubr.msk.f32.gmra.mrb[126].mxu0 %vm1426_vm2, %v1419_v20  ;;  %v4361_v25 = vpack.c.bf16 %v2286_v55, %v2285_v21 }
 0x1c6   :  { %4167 = vmatprep.mubr.msk.f32.mxu0 %vm4471_vm0, %v5968_v36  ;;  %4371 = vmatpush3.bf16.msra.mxu0 %v4370_v45 }
 0x1c7   :  { %v1420_v54 = vmax.f32 %v1393_v40, 0.0  ;;  %4362 = vmatpush3.bf16.msra.mxu1 %v4361_v25  ;;  %4378 = vmatprep.subr.bf16.mxu0 %v5970_v10 }
 0x1c8   :  { %4363 = vmatprep.subr.bf16.mxu1 %v5970_v10 }
 0x1c9   :  { %4168 = vmatmul.mubr.msk.f32.gmra.mrb[128].mxu0 %vm1426_vm2, %v1420_v54 }
 0x1ca   :  { %4194 = vmatprep.mubr.msk.f32.mxu0 %vm4471_vm0, %v5968_v36 }
 0x1cb   :  { %4365 = vmatpush3.bf16.msra.mxu1 %v4364_v31 }
 0x1cc   :  { %4181 = vmatprep.subr.mxu1 %v5968_v36 }
 0x234   :  { %v1591_v2 = vpop.f32.mrb[116].mxu1 }
 0x235   :  { %v4072_v46 = vpop.f32.mrb[117].mxu1 }
 0x238   :  { %v1596_v52 = vpop.f32.mrb[118].mxu1 }
 0x239   :  { %v4075_v14 = vpop.f32.mrb[119].mxu1 }
 0x23c   :  { %v1601_v39 = vpop.f32.mrb[120].mxu1 }
 0x23d   :  { %v4078_v24 = vpop.f32.mrb[121].mxu1 }
 0x240   :  { %v1502_v34 = vpop.f32.mrb[100].mxu0 }
 0x241   :  { %v1592_v58 = vadd.f32 %v1591_v2, %v1502_v34  ;;  %v4059_v12 = vpop.f32.mrb[101].mxu0 }
 0x242   :  { %v5735_v12 = vld [vmem:[%s5952_s5] ss:$0 sm:$0xff] }
 0x244   :  { %v1507_v9 = vpop.f32.mrb[102].mxu0 }
 0x245   :  { %v1597_v29 = vadd.f32 %v1596_v52, %v1507_v9  ;;  %v4062_v30 = vpop.f32.mrb[103].mxu0 }
 0x248   :  { %v1512_v53 = vpop.f32.mrb[104].mxu0 }
 0x249   :  { %v1602_v44 = vadd.f32 %v1601_v39, %v1512_v53  ;;  %v4065_v33 = vpop.f32.mrb[105].mxu0  ;;  %v3432_v53 = vld [vmem:[%s5953_s6 + $0x60] sm:$0xff] }
 0x24c   :  { %v1683_v15 = vpop.f32.mrb[106].mxu0 }
 0x24d   :  { %v1697_v0 = vadd.f32 %v1683_v15, %v1592_v58  ;;  %v4085_v23 = vpop.f32.mrb[107].mxu0 }
 0x250   :  { %v1688_v1 = vpop.f32.mrb[108].mxu0 }
 0x251   :  { %v1698_v38 = vadd.f32 %v1688_v1, %v1597_v29  ;;  %v4088_v48 = vpop.f32.mrb[109].mxu0  ;;  %v2284_v1 = vld [vmem:[%s5954_s7] sm:$0xff] }
 0x252   :  { %v3428_v48 = vld [vmem:[%s5953_s6 + $0x48] sm:$0xff] }
 0x254   :  { %v1693_v13 = vpop.f32.mrb[110].mxu0 }
 0x255   :  { %v1699_v57 = vadd.f32 %v1693_v13, %v1602_v44  ;;  %v4091_v32 = vpop.f32.mrb[111].mxu0  ;;  %v3433_v44 = vld [vmem:[%s5953_s6 + $0x68] sm:$0xff] }
 0x256   :  { %v4379_v13 = vpack.c.bf16 %v3433_v44, %v3432_v53  ;;  %v3434_v32 = vld [vmem:[%s5953_s6 + $0x70] sm:$0xff]  ;;  %v3077_v53 = vld [vmem:[%s5956_s9] sm:$0xff]  ;;  %v3078_v44 = vld [vmem:[%s5956_s9 + $0x8] sm:$0xff] }
 0x258   :  { %v1778_v27 = vpop.f32.mrb[122].mxu1 }
 0x259   :  { %v1792_v50 = vadd.f32 %v1778_v27, %v1697_v0  ;;  %v4098_v18 = vpop.f32.mrb[123].mxu1  ;;  %v3435_v27 = vld [vmem:[%s5953_s6 + $0x78] sm:$0xff] }
 0x25a   :  { %v2283_v18 = vld [vmem:[%s5948_s1] sm:$0x3] }
 0x25c   :  { %v1783_v47 = vpop.f32.mrb[124].mxu1 }
 0x25d   :  { %v1793_v7 = vadd.f32 %v1783_v47, %v1698_v38  ;;  %v4101_v42 = vpop.f32.mrb[125].mxu1  ;;  %v3427_v38 = vld [vmem:[%s5953_s6 + $0x40] sm:$0xff] }
 0x25e   :  { %v4373_v47 = vpack.c.bf16 %v3428_v48, %v3427_v38  ;;  %v3083_v38 = vld [vmem:[%s5956_s9 + $0x30] sm:$0xff]  ;;  %v3084_v48 = vld [vmem:[%s5956_s9 + $0x38] sm:$0xff] }
 0x260   :  { %v1788_v49 = vpop.f32.mrb[126].mxu1 }
 0x261   :  { %v1794_v62 = vadd.f32 %v1788_v49, %v1699_v57  ;;  %v4104_v43 = vpop.f32.mrb[127].mxu1  ;;  %v3429_v49 = vld [vmem:[%s5953_s6 + $0x50] sm:$0xff] }
 0x262   :  { %v4382_v43 = vpack.c.bf16 %v3435_v27, %v3434_v32  ;;  %v3086_v32 = vld [vmem:[%s5956_s9 + $0x48] sm:$0xff] }
 0x264   :  { %v1873_v3 = vpop.f32.mrb[112].mxu0 }
 0x265   :  { %v1887_v19 = vadd.f32 %v1873_v3, %v1792_v50  ;;  %v4111_v41 = vpop.f32.mrb[113].mxu0  ;;  %v3442_v3 = vld [vmem:[%s5953_s6 + $0xa0] sm:$0xff] }
 0x268   :  { %v1878_v11 = vpop.f32.mrb[114].mxu0 }
 0x269   :  { %v1888_v59 = vadd.f32 %v1878_v11, %v1793_v7  ;;  %v4114_v4 = vpop.f32.mrb[115].mxu0  ;;  %v3437_v11 = vld [vmem:[%s5953_s6 + $0x80] sm:$0xff] }
 0x26c   :  { %v1883_v56 = vpop.f32.mrb[116].mxu0 }
 0x26d   :  { %v1889_v5 = vadd.f32 %v1883_v56, %v1794_v62  ;;  %v4117_v51 = vpop.f32.mrb[117].mxu0  ;;  %v3430_v62 = vld [vmem:[%s5953_s6 + $0x58] sm:$0xff] }
 0x26e   :  { %v4376_v41 = vpack.c.bf16 %v3430_v62, %v3429_v49  ;;  %v3444_v51 = vld [vmem:[%s5953_s6 + $0xb0] sm:$0xff] }
 0x26f   :  { %v3091_v62 = vld [vmem:[%s5956_s9 + $0x70] sm:$0xff] }
 0x270   :  { %v1968_v6 = vpop.f32.mrb[128].mxu1 }
 0x271   :  { %v1982_v63 = vadd.f32 %v1968_v6, %v1887_v19  ;;  %v4124_v28 = vpop.f32.mrb[129].mxu1  ;;  %v3443_v19 = vld [vmem:[%s5953_s6 + $0xa8] sm:$0xff]  ;;  %v3445_v6 = vld [vmem:[%s5953_s6 + $0xb8] sm:$0xff] }
 0x272   :  { %v4391_v4 = vpack.c.bf16 %v3443_v19, %v3442_v3 }
 0x274   :  { %v1973_v20 = vpop.f32.mrb[130].mxu1 }
 0x275   :  { %v1983_v35 = vadd.f32 %v1973_v20, %v1888_v59  ;;  %v4127_v60 = vpop.f32.mrb[131].mxu1  ;;  %v3438_v59 = vld [vmem:[%s5953_s6 + $0x88] sm:$0xff]  ;;  %v3439_v20 = vld [vmem:[%s5953_s6 + $0x90] sm:$0xff] }
 0x276   :  { %v4394_v60 = vpack.c.bf16 %v3445_v6, %v3444_v51 }
 0x278   :  { %v1978_v40 = vpop.f32.mrb[132].mxu1 }
 0x279   :  { %v1984_v54 = vadd.f32 %v1978_v40, %v1889_v5  ;;  %v4130_v21 = vpop.f32.mrb[133].mxu1 }
 0x27a   :  { %v3453_v21 = vld [vmem:[%s5953_s6 + $0xe8] sm:$0xff] }
 0x27c   :  { %v2063_v55 = vpop.f32.mrb[118].mxu0 }
 0x27d   :  { %v2077_v25 = vadd.f32 %v2063_v55, %v1982_v63  ;;  %v4137_v61 = vpop.f32.mrb[119].mxu0  ;;  %v4385_v63 = vpack.c.bf16 %v3438_v59, %v3437_v11 }
 0x27e   :  { %v3448_v61 = vld [vmem:[%s5953_s6 + $0xc8] sm:$0xff] }
 0x280   :  { %v2068_v16 = vpop.f32.mrb[120].mxu0 }
 0x281   :  { %v2078_v17 = vadd.f32 %v2068_v16, %v1983_v35  ;;  %v4140_v26 = vpop.f32.mrb[121].mxu0  ;;  %v3440_v35 = vld [vmem:[%s5953_s6 + $0x98] sm:$0xff] }
 0x282   :  { %v4388_v55 = vpack.c.bf16 %v3440_v35, %v3439_v20  ;;  %v3454_v26 = vld [vmem:[%s5953_s6 + $0xf0] sm:$0xff] }
 0x284   :  { %v2073_v22 = vpop.f32.mrb[122].mxu0 }
 0x285   :  { %v2079_v31 = vadd.f32 %v2073_v22, %v1984_v54  ;;  %v4143_v37 = vpop.f32.mrb[123].mxu0  ;;  %v3452_v54 = vld [vmem:[%s5953_s6 + $0xe0] sm:$0xff]  ;;  %v3455_v22 = vld [vmem:[%s5953_s6 + $0xf8] sm:$0xff] }
 0x286   :  { %v4403_v16 = vpack.c.bf16 %v3453_v21, %v3452_v54  ;;  %v3449_v37 = vld [vmem:[%s5953_s6 + $0xd0] sm:$0xff] }
 0x288   :  { %v2158_v8 = vpop.f32.mrb[134].mxu1 }
 0x289   :  { %v2172_v45 = vadd.f32 %v2158_v8, %v2077_v25  ;;  %v4150_v2 = vpop.f32.mrb[135].mxu1  ;;  %v3447_v25 = vld [vmem:[%s5953_s6 + $0xc0] sm:$0xff]  ;;  %v3450_v8 = vld [vmem:[%s5953_s6 + $0xd8] sm:$0xff] }
 0x28a   :  { %v4400_v2 = vpack.c.bf16 %v3450_v8, %v3449_v37  ;;  %v3462_v8 = vld [vmem:[%s5955_s8] ss:$0 sm:$0xff] }
 0x28c   :  { %v2163_v46 = vpop.f32.mrb[136].mxu1 }
 0x28d   :  { %v2173_v52 = vadd.f32 %v2163_v46, %v2078_v17  ;;  %v4153_v14 = vpop.f32.mrb[137].mxu1  ;;  %v3457_v46 = vld [vmem:[%s5953_s6 + $0x100] sm:$0xff] }
 0x290   :  { %v2168_v39 = vpop.f32.mrb[138].mxu1 }
 0x291   :  { %v2174_v24 = vadd.f32 %v2168_v39, %v2079_v31  ;;  %v4156_v34 = vpop.f32.mrb[139].mxu1  ;;  %v4397_v31 = vpack.c.bf16 %v3448_v61, %v3447_v25 }
 0x292   :  { %v3459_v34 = vld [vmem:[%s5953_s6 + $0x110] sm:$0xff] }
 0x294   :  { %v2253_v58 = vpop.f32.mrb[124].mxu0 }
 0x295   :  { %v2267_v9 = vadd.f32 %v2253_v58, %v2172_v45  ;;  %v4163_v29 = vpop.f32.mrb[125].mxu0  ;;  %v4406_v45 = vpack.c.bf16 %v3455_v22, %v3454_v26  ;;  %v3460_v58 = vld [vmem:[%s5953_s6 + $0x118] sm:$0xff] }
 0x297   :  { %v2277_v30 = vadd.f32 %v5735_v12, %v2267_v9  ;;  %v4412_v9 = vpack.c.bf16 %v3460_v58, %v3459_v34 }
 0x298   :  { %v2258_v33 = vpop.f32.mrb[126].mxu0 }
 0x299   :  { %v2280_v15 = vmax.f32 %v2277_v30, 0.0  ;;  %v2268_v0 = vadd.f32 %v2258_v33, %v2173_v52  ;;  %v4166_v23 = vpop.f32.mrb[127].mxu0  ;;  %v3458_v52 = vld [vmem:[%s5953_s6 + $0x108] sm:$0xff]  ;;  %v4415_v33 = vpack.c.bf16 %v3078_v44, %v3077_v53 }
 0x29a   :  { %v4409_v39 = vpack.c.bf16 %v3458_v52, %v3457_v46  ;;  %v3082_v23 = vld [vmem:[%s5956_s9 + $0x28] sm:$0xff] }
 0x29b   :  { %v2441_v57 = vrot.slane %v2280_v15, 2  ;;  %4179 = vmatmul.mubr.msk.f32.vlgmr.msra.gmra.mrb[140].mxu1 %vm70_vm1, %v2280_v15  ;;  %v2599_v56 = vrot.slane %v2280_v15, 6  ;;  %v2278_v5 = vadd.f32 %v5735_v12, %v2268_v0  ;;  %v2520_v28 = vrot.slane %v2280_v15, 4  ;;  %v3081_v0 = vld [vmem:[%s5956_s9 + $0x20] sm:$0xff] }
 0x29c   :  { %v2263_v50 = vpop.f32.mrb[128].mxu0  ;;  %4182 = vmatpush3.msra.mxu1 %v2284_v1  ;;  %4183 = vmatprep.mubr.msk.f32.mxu1 %vm4471_vm0, %v5968_v36  ;;  %v4421_v1 = vpack.c.bf16 %v3082_v23, %v3081_v0 }
 0x29d   :  { %v5765_v7 = vadd.f32 %v2263_v50, %v2174_v24  ;;  %v4169_v42 = vpop.f32.mrb[129].mxu0  ;;  %4195 = vmatmul.mubr.msk.f32.vlgmr.msra.gmra.mrb[130].mxu0 %vm70_vm1, %v2441_v57  ;;  %4372 = vmatprep.subr.bf16.mxu1 %v5970_v10  ;;  %v2281_v40 = vmax.f32 %v2278_v5, 0.0  ;;  %v3085_v57 = vld [vmem:[%s5956_s9 + $0x40] sm:$0xff]  ;;  %v3087_v50 = vld [vmem:[%s5956_s9 + $0x50] sm:$0xff] }
 0x29e   :  { %4380 = vmatpush3.bf16.msra.mxu0 %v4379_v13  ;;  %4216 = vmatprep.mubr.msk.f32.mxu0 %vm4471_vm0, %v5968_v36  ;;  %v4424_v13 = vpack.c.bf16 %v3084_v48, %v3083_v38  ;;  %v4427_v27 = vpack.c.bf16 %v3086_v32, %v3085_v57  ;;  %v3090_v42 = vld [vmem:[%s5956_s9 + $0x68] sm:$0xff] }
 0x29f   :  { %4184 = vmatmul.mubr.msk.f32.vlgmr.msra.gmra.mrb[142].mxu1 %vm2362_vm3, %v2283_v18  ;;  %4381 = vmatprep.subr.bf16.mxu0 %v5970_v10  ;;  %v2757_v17 = vrot.slane %v2281_v40, 2  ;;  %v2915_v14 = vrot.slane %v2281_v40, 6  ;;  %v2836_v24 = vrot.slane %v2281_v40, 4  ;;  %v2279_v29 = vadd.f32 %v5735_v12, %v5765_v7  ;;  %v3080_v12 = vld [vmem:[%s5956_s9 + $0x18] sm:$0xff]  ;;  %v3089_v7 = vld [vmem:[%s5956_s9 + $0x60] sm:$0xff] }
 0x2a0   :  { %4374 = vmatpush3.bf16.msra.mxu1 %v4373_v47  ;;  %4205 = vmatprep.mubr.msk.f32.mxu1 %vm4471_vm0, %v5968_v36  ;;  %v3088_v18 = vld [vmem:[%s5956_s9 + $0x58] sm:$0xff]  ;;  %v4433_v49 = vpack.c.bf16 %v3090_v42, %v3089_v7 }
 0x2a1   :  { %4375 = vmatprep.subr.bf16.mxu1 %v5970_v10  ;;  %v2282_v30 = vmax.f32 %v2279_v29, 0.0  ;;  %v4430_v47 = vpack.c.bf16 %v3088_v18, %v3087_v50 }
 0x2a2   :  { %4383 = vmatpush3.bf16.msra.mxu0 %v4382_v43  ;;  %v3092_v43 = vld [vmem:[%s5956_s9 + $0x78] sm:$0xff] }
 0x2a3   :  { %4390 = vmatprep.subr.bf16.mxu0 %v5970_v10  ;;  %v4436_v3 = vpack.c.bf16 %v3092_v43, %v3091_v62 }
 0x2a4   :  { %4377 = vmatpush3.bf16.msra.mxu1 %v4376_v41 }
 0x2a5   :  { %4217 = vmatmul.mubr.msk.f32.vlgmr.msra.gmra.mrb[132].mxu0 %vm70_vm1, %v2599_v56  ;;  %4384 = vmatprep.subr.bf16.mxu1 %v5970_v10 }
 0x2a6   :  { %4392 = vmatpush3.bf16.msra.mxu0 %v4391_v4  ;;  %4238 = vmatprep.mubr.msk.f32.mxu0 %vm4471_vm0, %v5968_v36 }
 0x2a7   :  { %4206 = vmatmul.mubr.msk.f32.vlgmr.msra.gmra.mrb[144].mxu1 %vm70_vm1, %v2520_v28  ;;  %4393 = vmatprep.subr.bf16.mxu0 %v5970_v10 }
 0x2a8   :  { %4386 = vmatpush3.bf16.msra.mxu1 %v4385_v63  ;;  %4227 = vmatprep.mubr.msk.f32.mxu1 %vm4471_vm0, %v5968_v36 }
 0x2a9   :  { %4387 = vmatprep.subr.bf16.mxu1 %v5970_v10 }
 0x2aa   :  { %4395 = vmatpush3.bf16.msra.mxu0 %v4394_v60 }
 0x2ab   :  { %4402 = vmatprep.subr.bf16.mxu0 %v5970_v10 }
 0x2ac   :  { %4389 = vmatpush3.bf16.msra.mxu1 %v4388_v55 }
 0x2ad   :  { %4239 = vmatmul.mubr.msk.f32.vlgmr.msra.gmra.mrb[134].mxu0 %vm70_vm1, %v2757_v17  ;;  %4396 = vmatprep.subr.bf16.mxu1 %v5970_v10 }
 0x2ae   :  { %4404 = vmatpush3.bf16.msra.mxu0 %v4403_v16  ;;  %4260 = vmatprep.mubr.msk.f32.mxu0 %vm4471_vm0, %v5968_v36 }
 0x2af   :  { %4228 = vmatmul.mubr.msk.f32.vlgmr.msra.gmra.mrb[146].mxu1 %vm70_vm1, %v2281_v40  ;;  %4405 = vmatprep.subr.bf16.mxu0 %v5970_v10 }
 0x2b0   :  { %4398 = vmatpush3.bf16.msra.mxu1 %v4397_v31  ;;  %4249 = vmatprep.mubr.msk.f32.mxu1 %vm4471_vm0, %v5968_v36 }
 0x2b1   :  { %4399 = vmatprep.subr.bf16.mxu1 %v5970_v10 }
 0x2b2   :  { %4407 = vmatpush3.bf16.msra.mxu0 %v4406_v45 }
 0x2b3   :  { %4414 = vmatprep.subr.bf16.mxu0 %v5970_v10 }
 0x2b4   :  { %4401 = vmatpush3.bf16.msra.mxu1 %v4400_v2 }
 0x2b5   :  { %4261 = vmatmul.mubr.msk.f32.vlgmr.msra.gmra.mrb[136].mxu0 %vm70_vm1, %v2915_v14  ;;  %4408 = vmatprep.subr.bf16.mxu1 %v5970_v10  ;;  %v3463_v14 = vld [vmem:[%s5957_s10] ss:$0 sm:$0xff] }
 0x2b6   :  { %4306 = vmatprep.mubr.msk.f32.mxu0 %vm4471_vm0, %v5968_v36  ;;  %4416 = vmatpush3.bf16.msra.mxu0 %v4415_v33 }
 0x2b7   :  { %4250 = vmatmul.mubr.msk.f32.vlgmr.msra.gmra.mrb[148].mxu1 %vm70_vm1, %v2836_v24  ;;  %4417 = vmatprep.subr.bf16.mxu0 %v5970_v10 }
 0x2b8   :  { %4410 = vmatpush3.bf16.msra.mxu1 %v4409_v39  ;;  %4271 = vmatprep.mubr.msk.f32.mxu1 %vm4471_vm0, %v5968_v36  ;;  %v3079_v36 = vld [vmem:[%s5956_s9 + $0x10] sm:$0xff] }
 0x2b9   :  { %4411 = vmatprep.subr.bf16.mxu1 %v5970_v10  ;;  %v4418_v15 = vpack.c.bf16 %v3080_v12, %v3079_v36 }
 0x2bb   :  { %4419 = vmatpush3.bf16.msra.mxu0 %v4418_v15 }
 0x2bc   :  { %4413 = vmatpush3.bf16.msra.mxu1 %v4412_v9  ;;  %4420 = vmatprep.subr.bf16.mxu0 %v5970_v10 }
 0x2bf   :  { %4272 = vmatmul.mubr.msk.f32.vlgmr.msra.gmra.mrb[150].mxu1 %vm70_vm1, %v2282_v30  ;;  %4422 = vmatpush3.bf16.msra.mxu0 %v4421_v1 }
 0x2c0   :  { %4423 = vmatprep.subr.bf16.mxu0 %v5970_v10 }
 0x2c3   :  { %4425 = vmatpush3.bf16.msra.mxu0 %v4424_v13 }
 0x2c4   :  { %4426 = vmatprep.subr.bf16.mxu0 %v5970_v10 }
 0x2c7   :  { %4428 = vmatpush3.bf16.msra.mxu0 %v4427_v27 }
 0x2c8   :  { %4429 = vmatprep.subr.bf16.mxu0 %v5970_v10 }
 0x2cb   :  { %4431 = vmatpush3.bf16.msra.mxu0 %v4430_v47 }
 0x2cc   :  { %4432 = vmatprep.subr.bf16.mxu0 %v5970_v10 }
 0x2cf   :  { %4434 = vmatpush3.bf16.msra.mxu0 %v4433_v49 }
 0x2d0   :  { %4435 = vmatprep.subr.bf16.mxu0 %v5970_v10 }
 0x2d3   :  { %4437 = vmatpush3.bf16.msra.mxu0 %v4436_v3 }
 0x36e   :  { %v2358_v19 = vpop.f32.mrb[140].mxu1 }
 0x36f   :  { %v4180_v41 = vpop.f32.mrb[141].mxu1 }
 0x370   :  { %v2510_v11 = vpop.f32.mrb[130].mxu0 }
 0x371   :  { %v4196_v59 = vpop.f32.mrb[131].mxu0 }
 0x372   :  { %v2432_v4 = vpop.f32.mrb[142].mxu1 }
 0x373   :  { %v2433_v56 = vadd.f32 %v2432_v4, %v2358_v19  ;;  %v4185_v5 = vpop.f32.mrb[143].mxu1 }
 0x375   :  { %v2514_v51 = vadd.f32 %v2510_v11, %v2433_v56 }
 0x378   :  { %v2668_v6 = vpop.f32.mrb[132].mxu0 }
 0x379   :  { %v4218_v10 = vpop.f32.mrb[133].mxu0 }
 0x37a   :  { %v2589_v63 = vpop.f32.mrb[144].mxu1 }
 0x37b   :  { %v2593_v28 = vadd.f32 %v2589_v63, %v2514_v51  ;;  %v4207_v20 = vpop.f32.mrb[145].mxu1 }
 0x37d   :  { %v2672_v35 = vadd.f32 %v2668_v6, %v2593_v28 }
 0x380   :  { %v2826_v60 = vpop.f32.mrb[134].mxu0 }
 0x381   :  { %v4240_v40 = vpop.f32.mrb[135].mxu0 }
 0x382   :  { %v2747_v54 = vpop.f32.mrb[146].mxu1 }
 0x383   :  { %v2751_v21 = vadd.f32 %v2747_v54, %v2672_v35  ;;  %v4229_v55 = vpop.f32.mrb[147].mxu1 }
 0x385   :  { %v2830_v25 = vadd.f32 %v2826_v60, %v2751_v21 }
 0x388   :  { %v2984_v61 = vpop.f32.mrb[136].mxu0 }
 0x389   :  { %v4262_v16 = vpop.f32.mrb[137].mxu0 }
 0x38a   :  { %v2905_v17 = vpop.f32.mrb[148].mxu1 }
 0x38b   :  { %v2909_v26 = vadd.f32 %v2905_v17, %v2830_v25  ;;  %v4251_v22 = vpop.f32.mrb[149].mxu1 }
 0x38d   :  { %v2988_v31 = vadd.f32 %v2984_v61, %v2909_v26 }
 0x392   :  { %v3063_v37 = vpop.f32.mrb[150].mxu1 }
 0x393   :  { %v3067_v45 = vadd.f32 %v3063_v37, %v2988_v31  ;;  %v4273_v2 = vpop.f32.mrb[151].mxu1 }
 0x395   :  { %v3075_v46 = vadd.f32 %v3462_v8, %v3067_v45 }
 0x397   :  { %v3076_v52 = vmax.f32 %v3075_v46, 0.0 }
 0x399   :  { %4307 = vmatmul.mubr.f32.vlgmr.msra.gmra.mrb[138].mxu0 %v3076_v52 }
 0x46c   :  { %v3166_v39 = vpop.f32.mrb[138].mxu0 }
 0x46d   :  { %v3167_v24 = vadd.f32 %v3463_v14, %v3166_v39  ;;  %v4308_v34 = vpop.f32.mrb[139].mxu0 }
 0x46f   :  { %3171 = vst.msk [vmem:[#allocation2] sm:$0x3] %vm3170_vm4, %v3167_v24 }
 0x470   :  { %4457 = shalt.err (!%p4454_p4)
}
 0x471   :  { %s4458_s26 = scalar_lea.hbm %s5958_s11, 32 }
 0x472   :  { %p4459_p5 = scmp.ne.s32.totalorder %s5958_s11, %s4458_s26  ;;  %p4462_p6 = scmp.lt.u32.totalorder %s4458_s26, %s5958_s11 }
 0x474   :  { %p4464_p7 = pnand %p4462_p6, %p4459_p5 }
 0x476   :  { %4467 = shalt.err (!%p4464_p7)
}
 0x477   :  { %3181 = dma.vmem_to_hbm [thread:$0]  %s3179_s23, 32, %s5958_s11, [#allocation3]  }
 0x478   :  { %4468 = dma.done.wait [#allocation3], 32  }
 0x479   :  { %4469 = vsyncadd [#allocation3], 4294967264 }
 0x47a   :  { %3185 = vsyncpa [#allocation3], 1 }

</bundles_post_ra>
